<compile_context>
chip_gen: v7x
topology: tpu7x:2x2x1
jax: 0.10.0
libtpu: 0.0.40
codegen_flags: <defaults>
</compile_context>

<pallas_src>
import math

import numpy as np

import jax
import jax.numpy as jnp
from jax import lax
from jax.experimental import pallas as pl
from jax.experimental.pallas import tpu as pltpu

_LANE = 128


def _round_up(x, m):
    return (x + m - 1) // m * m


# ---------------------------------------------------------------------------
# Kernel 1: MaxPool3d(3).  Input block (27, RT, 128): the 27 window taps sit
# on the leading axis, outputs are laid out lane-dense over a (rows, 128)
# plane.  Reduction over axis 0 is pure VPU max; the store is a full-width
# (RT,128) vst.
# ---------------------------------------------------------------------------
def _maxpool_kernel(x_ref, o_ref):
    o_ref[...] = jnp.max(x_ref[...], axis=0)


# ---------------------------------------------------------------------------
# Kernel 2: per sample -- three dilated 3x3x3 convs (+bias) -> PReLU ->
# GroupNorm(8, C) -> concat -> 1x1x1 output conv (fused as one matmul).
# ---------------------------------------------------------------------------
def _make_aspp_kernel(S, Cp, Dp, Hp, Wp, rates, eps=1e-5):
    HW = Hp * Wp
    n_br = len(rates)

    def kernel(x_ref, m_ref, w_ref, b_ref, a_ref, gw_ref, gb_ref, p_ref,
               wo_ref, bo_ref, o_ref, acc_ref, ybuf_ref):
        # pooled activations: load once, cast once to bf16 for the MXU.
        xb = x_ref[...].astype(jnp.bfloat16)                    # (S, Cin)

        for bi in range(n_br):
            r = rates[bi]
            acc_ref[...] = jnp.zeros_like(acc_ref)              # f32 accum
            # dilated 3x3x3 conv as shifted matmul-accumulations.
            for kd in range(3):
                for kh in range(3):
                    for kw in range(3):
                        od, oh, ow = (kd - 1) * r, (kh - 1) * r, (kw - 1) * r
                        # tap reads only zero padding -> skip at trace time
                        if abs(od) >= Dp or abs(oh) >= Hp or abs(ow) >= Wp:
                            continue
                        t = (kd * 3 + kh) * 3 + kw
                        R = od * HW + oh * Wp + ow              # flat row shift
                        src0, dst0, L = max(0, R), max(0, -R), S - abs(R)
                        c = jnp.dot(xb[src0:src0 + L, :], w_ref[bi, t],
                                    preferred_element_type=jnp.float32)
                        if oh != 0 or ow != 0:
                            # zero the rows whose h/w neighbour wrapped around
                            c = c * m_ref[bi, t, dst0:dst0 + L, :]
                        acc_ref[dst0:dst0 + L, :] += c

            # bias + PReLU (f32 VPU)
            y = acc_ref[...] + b_ref[bi]
            y = jnp.where(y >= 0.0, y, a_ref[bi] * y)

            # GroupNorm(8, C): per-group mean / mean-square via the hoisted
            # group-averaging projection P (constant input).
            s1 = jnp.sum(y, axis=0, keepdims=True)              # (1, Cp)
            s2 = jnp.sum(y * y, axis=0, keepdims=True)          # (1, Cp)
            mean = jnp.dot(s1, p_ref[...], preferred_element_type=jnp.float32)
            msq = jnp.dot(s2, p_ref[...], preferred_element_type=jnp.float32)
            var = jnp.maximum(msq - mean * mean, 0.0)           # clamp cancel.
            y = (y - mean) * lax.rsqrt(var + jnp.float32(eps))
            y = y * gw_ref[bi] + gb_ref[bi]

            ybuf_ref[:, bi * Cp:(bi + 1) * Cp] = y.astype(jnp.bfloat16)

        # channel-concat + 1x1x1 conv fused into ONE (S,3Cp)x(3Cp,Cp) matmul.
        out = jnp.dot(ybuf_ref[...], wo_ref[...],
                      preferred_element_type=jnp.float32)
        o_ref[...] = (out + bo_ref[...]).astype(o_ref.dtype)

    return kernel


# ---------------------------------------------------------------------------
# Wrapper: pure layout glue + parameter flattening.
# ---------------------------------------------------------------------------
def aspp_forward(x, params, rates=(6, 12, 18)):
    """x: (N, Cin, D, H, W) f32 (NCDHW). Returns (N, Cout, D//3, H//3, W//3)."""
    N, Cin, D, H, W = x.shape
    assert D % 3 == 0 and H % 3 == 0 and W % 3 == 0, "spatial dims must be /3"
    Dp, Hp, Wp = D // 3, H // 3, W // 3
    S = Dp * Hp * Wp
    HW = Hp * Wp
    Cout = params["gn_w"].shape[-1]
    assert Cout % 8 == 0, "GroupNorm(8) needs Cout % 8 == 0"
    Cg = Cout // 8
    Cp = _round_up(Cout, _LANE)          # lane-dense padded channel count
    pc = Cp - Cout

    # ---------------- MaxPool3d(3) (lane-dense, tiled) ----------------
    M = N * S * Cin
    xw = x.reshape(N, Cin, Dp, 3, Hp, 3, Wp, 3)
    # -> (kd, kh, kw, n, dp, hp, wp, c): flat order matches pooled (N, S, Cin)
    xw = xw.transpose(3, 5, 7, 0, 2, 4, 6, 1).reshape(27, M)
    RT = 64 if M > 64 * 8 * _LANE else 8
    Mp = _round_up(M, RT * _LANE)
    xw = jnp.pad(xw, ((0, 0), (0, Mp - M)))
    rows = Mp // _LANE
    xw = xw.reshape(27, rows, _LANE)
    pooled = pl.pallas_call(
        _maxpool_kernel,
        out_shape=jax.ShapeDtypeStruct((rows, _LANE), jnp.float32),
        grid=(rows // RT,),
        in_specs=[pl.BlockSpec((27, RT, _LANE), lambda i: (0, i, 0))],
        out_specs=pl.BlockSpec((RT, _LANE), lambda i: (i, 0)),
        compiler_params=pltpu.CompilerParams(
            dimension_semantics=("parallel",)),
    )(xw)
    pooled = pooled.reshape(Mp)[:M].reshape(N, S, Cin)   # channels-last

    # ---------------- static edge masks for the shifted-conv taps -----------
    ar = np.arange(S)
    d_i, h_i, w_i = ar // HW, (ar // Wp) % Hp, ar % Wp
    mask_np = np.zeros((3, 27, S, 1), np.float32)
    for bi, r in enumerate(rates):
        for kd in range(3):
            for kh in range(3):
                for kw in range(3):
                    od, oh, ow = (kd - 1) * r, (kh - 1) * r, (kw - 1) * r
                    ok = ((d_i + od >= 0) & (d_i + od < Dp) &
                          (h_i + oh >= 0) & (h_i + oh < Hp) &
                          (w_i + ow >= 0) & (w_i + ow < Wp))
                    mask_np[bi, (kd * 3 + kh) * 3 + kw, :, 0] = ok
    masks = jnp.asarray(mask_np)

    # GroupNorm group-averaging projection (hoisted out of the kernel).
    p_np = np.zeros((Cp, Cp), np.float32)
    for g in range(8):
        lo, hi = g * Cg, (g + 1) * Cg
        p_np[lo:hi, lo:hi] = 1.0 / float(S * Cg)
    P = jnp.asarray(p_np)

    # ---------------- flatten / pad parameters (bf16 matmul operands) -------
    w_all = params["w"].transpose(0, 3, 4, 5, 2, 1).reshape(3, 27, Cin, Cout)
    w_all = jnp.pad(w_all, ((0, 0), (0, 0), (0, 0), (0, pc))).astype(jnp.bfloat16)
    b_all = jnp.pad(params["b"], ((0, 0), (0, pc))).reshape(3, 1, Cp)
    a_all = jnp.broadcast_to(params["prelu_a"].reshape(3, 1, 1),
                             (3, 1, Cp)).astype(jnp.float32)
    gw_all = jnp.pad(params["gn_w"], ((0, 0), (0, pc))).reshape(3, 1, Cp)
    gb_all = jnp.pad(params["gn_b"], ((0, 0), (0, pc))).reshape(3, 1, Cp)
    wo = params["wout"].reshape(Cout, 3, Cout).transpose(1, 2, 0)  # (3, c, o)
    wo = jnp.pad(wo, ((0, 0), (0, pc), (0, pc)))
    wout_all = wo.reshape(3 * Cp, Cp).astype(jnp.bfloat16)
    bout_all = jnp.pad(params["bout"], (0, pc)).reshape(1, Cp)

    def _const(a):
        return pl.BlockSpec(a.shape, lambda n: (0,) * a.ndim)

    kern = _make_aspp_kernel(S, Cp, Dp, Hp, Wp, tuple(rates))
    out_pad = pl.pallas_call(
        kern,
        out_shape=jax.ShapeDtypeStruct((N, S, Cp), jnp.float32),
        grid=(N,),
        in_specs=[
            pl.BlockSpec((None, S, Cin), lambda n: (n, 0, 0)),   # per sample
            _const(masks), _const(w_all), _const(b_all), _const(a_all),
            _const(gw_all), _const(gb_all), _const(P), _const(wout_all),
            _const(bout_all),
        ],
        out_specs=pl.BlockSpec((None, S, Cp), lambda n: (n, 0, 0)),
        scratch_shapes=[pltpu.VMEM((S, Cp), jnp.float32),        # conv accum
                        pltpu.VMEM((S, 3 * Cp), jnp.bfloat16)],  # concat buf
        compiler_params=pltpu.CompilerParams(
            dimension_semantics=("parallel",)),
    )(pooled, masks, w_all, b_all, a_all, gw_all, gb_all, P, wout_all,
      bout_all)

    out = out_pad[:, :, :Cout].reshape(N, Dp, Hp, Wp, Cout)
    return out.transpose(0, 4, 1, 2, 3)                         # back to NCDHW


# ---------------------------------------------------------------------------
# Deterministic parameter init (mirrors ASPP.__init__ / _init_weights)
# ---------------------------------------------------------------------------
def init_aspp_params(key, in_dims, out_dims):
    k1, k2, k3, k4 = jax.random.split(key, 4)
    fan_in = in_dims * 27
    std = math.sqrt(2.0 / fan_in)                      # kaiming_normal_
    w = std * jax.random.normal(k1, (3, out_dims, in_dims, 3, 3, 3), jnp.float32)
    bb = 1.0 / math.sqrt(fan_in)                       # default conv bias init
    b = jax.random.uniform(k2, (3, out_dims), jnp.float32, -bb, bb)
    fan_in_o = 3 * out_dims
    std_o = math.sqrt(2.0 / fan_in_o)
    wout = std_o * jax.random.normal(k3, (out_dims, 3 * out_dims), jnp.float32)
    bbo = 1.0 / math.sqrt(fan_in_o)
    bout = jax.random.uniform(k4, (out_dims,), jnp.float32, -bbo, bbo)
    return {
        "w": w, "b": b,
        "prelu_a": jnp.full((3,), 0.25, jnp.float32),          # nn.PReLU default
        "gn_w": jnp.ones((3, out_dims), jnp.float32),          # GroupNorm weight=1
        "gn_b": jnp.zeros((3, out_dims), jnp.float32),         # GroupNorm bias=0
        "wout": wout, "bout": bout,
    }


# ---------------------------------------------------------------------------
# Pure-JAX reference (mirrors the PyTorch module) for a numerical sanity check
# ---------------------------------------------------------------------------
def _aspp_reference(x, params, rates=(6, 12, 18)):
    N, Cin, D, H, W = x.shape
    Dp, Hp, Wp = D // 3, H // 3, W // 3
    Cout = params["gn_w"].shape[-1]
    xp = x.reshape(N, Cin, Dp, 3, Hp, 3, Wp, 3).max(axis=(3, 5, 7))
    outs = []
    for i, r in enumerate(rates):
        y = lax.conv_general_dilated(
            xp, params["w"][i], window_strides=(1, 1, 1),
            padding=[(r, r)] * 3, rhs_dilation=(r, r, r),
            dimension_numbers=("NCDHW", "OIDHW", "NCDHW"))
        y = y + params["b"][i].reshape(1, Cout, 1, 1, 1)
        y = jnp.where(y >= 0, y, params["prelu_a"][i] * y)
        g = y.reshape(N, 8, Cout // 8, Dp, Hp, Wp)
        mean = g.mean(axis=(2, 3, 4, 5), keepdims=True)
        var = g.var(axis=(2, 3, 4, 5), keepdims=True)
        g = (g - mean) / jnp.sqrt(var + 1e-5)
        y = g.reshape(N, Cout, Dp, Hp, Wp)
        y = (y * params["gn_w"][i].reshape(1, Cout, 1, 1, 1)
             + params["gn_b"][i].reshape(1, Cout, 1, 1, 1))
        outs.append(y)
    cat = jnp.concatenate(outs, axis=1)
    return (jnp.einsum("ncdhw,oc->nodhw", cat, params["wout"])
            + params["bout"].reshape(1, Cout, 1, 1, 1))


if __name__ == "__main__":
    key = jax.random.PRNGKey(0)
    kx, kp = jax.random.split(key)
    N, in_dims, out_dims = 2, 4, 16
    D = H = W = 12                       # -> pooled spatial 4x4x4
    x = jax.random.normal(kx, (N, in_dims, D, H, W), jnp.float32)
    params = init_aspp_params(kp, in_dims, out_dims)

    fwd = jax.jit(aspp_forward)
    out = jax.block_until_ready(fwd(x, params))
    assert out.shape == (N, out_dims, D // 3, H // 3, W // 3), out.shape
    assert bool(jnp.all(jnp.isfinite(out)))

    ref = _aspp_reference(x, params)
    rel = jnp.linalg.norm(out - ref) / jnp.linalg.norm(ref)
    assert float(rel) < 5e-2, f"relative error too large: {float(rel)}"
    print("KERNEL_OK")
</pallas_src>

<mosaic_0001>
module attributes {stable_mosaic.version = 11 : i64} {
  func.func @_maxpool_kernel(%arg0: i32, %arg1: memref<27x8x128xf32, #tpu.memory_space<vmem>>, %arg2: memref<8x128xf32, #tpu.memory_space<vmem>>) attributes {dimension_semantics = [#tpu.dimension_semantics<parallel>], iteration_bounds = array<i64: 1>, scalar_prefetch = 0 : i64, scratch_operands = 0 : i64, tpu.core_type = #tpu.core_type<tc>, window_params = [{transform_indices = @transform_0, window_bounds = array<i64: 27, 8, 128>}, {transform_indices = @transform_1, window_bounds = array<i64: 8, 128>}]} {
    %c0 = arith.constant 0 : index
    %c0_0 = arith.constant 0 : index
    %c0_1 = arith.constant 0 : index
    %0 = vector.load %arg1[%c0, %c0_0, %c0_1] : memref<27x8x128xf32, #tpu.memory_space<vmem>>, vector<27x8x128xf32>
    %cst = arith.constant dense<0xFF800000> : vector<8x128xf32>
    %1 = vector.multi_reduction <maximumf>, %0, %cst [0] : vector<27x8x128xf32> to vector<8x128xf32>
    %c0_2 = arith.constant 0 : index
    %c0_3 = arith.constant 0 : index
    %2 = vector.load %arg2[%c0_2, %c0_3] : memref<8x128xf32, #tpu.memory_space<vmem>>, vector<8x128xf32>
    tpu.vector_store %arg2[%c0_2, %c0_3], %1 {strides = array<i32>} : memref<8x128xf32, #tpu.memory_space<vmem>>, vector<8x128xf32>,
    return
  }
  func.func @transform_0(%arg0: i32) -> (i32, i32, i32) {
    %c0_i32 = arith.constant 0 : i32
    %c0_i32_0 = arith.constant 0 : i32
    %c0_i32_1 = arith.constant 0 : i32
    return %c0_i32, %arg0, %c0_i32_0 : i32, i32, i32
  }
  func.func @transform_1(%arg0: i32) -> (i32, i32) {
    %c0_i32 = arith.constant 0 : i32
    %c0_i32_0 = arith.constant 0 : i32
    return %arg0, %c0_i32 : i32, i32
  }
}

module attributes {stable_mosaic.version = 11 : i64} {
  func.func @kernel(%arg0: i32, %arg1: memref<1x64x4xf32, #tpu.memory_space<vmem>>, %arg2: memref<3x27x64x1xf32, #tpu.memory_space<vmem>>, %arg3: memref<3x27x4x128xbf16, #tpu.memory_space<vmem>>, %arg4: memref<3x1x128xf32, #tpu.memory_space<vmem>>, %arg5: memref<3x1x128xf32, #tpu.memory_space<vmem>>, %arg6: memref<3x1x128xf32, #tpu.memory_space<vmem>>, %arg7: memref<3x1x128xf32, #tpu.memory_space<vmem>>, %arg8: memref<128x128xf32, #tpu.memory_space<vmem>>, %arg9: memref<384x128xbf16, #tpu.memory_space<vmem>>, %arg10: memref<1x128xf32, #tpu.memory_space<vmem>>, %arg11: memref<1x64x128xf32, #tpu.memory_space<vmem>>, %arg12: memref<64x128xf32, #tpu.memory_space<vmem>>, %arg13: memref<64x384xbf16, #tpu.memory_space<vmem>>) attributes {dimension_semantics = [#tpu.dimension_semantics<parallel>], iteration_bounds = array<i64: 2>, scalar_prefetch = 0 : i64, scratch_operands = 2 : i64, tpu.core_type = #tpu.core_type<tc>, window_params = [{transform_indices = @transform_0, window_bounds = array<i64: 1, 64, 4>}, {pipeline_mode = #tpu.pipeline_mode<synchronous>, transform_indices = @transform_1, window_bounds = array<i64: 3, 27, 64, 1>}, {pipeline_mode = #tpu.pipeline_mode<synchronous>, transform_indices = @transform_2, window_bounds = array<i64: 3, 27, 4, 128>}, {pipeline_mode = #tpu.pipeline_mode<synchronous>, transform_indices = @transform_3, window_bounds = array<i64: 3, 1, 128>}, {pipeline_mode = #tpu.pipeline_mode<synchronous>, transform_indices = @transform_4, window_bounds = array<i64: 3, 1, 128>}, {pipeline_mode = #tpu.pipeline_mode<synchronous>, transform_indices = @transform_5, window_bounds = array<i64: 3, 1, 128>}, {pipeline_mode = #tpu.pipeline_mode<synchronous>, transform_indices = @transform_6, window_bounds = array<i64: 3, 1, 128>}, {pipeline_mode = #tpu.pipeline_mode<synchronous>, transform_indices = @transform_7, window_bounds = array<i64: 128, 128>}, {pipeline_mode = #tpu.pipeline_mode<synchronous>, transform_indices = @transform_8, window_bounds = array<i64: 384, 128>}, {pipeline_mode = #tpu.pipeline_mode<synchronous>, transform_indices = @transform_9, window_bounds = array<i64: 1, 128>}, {transform_indices = @transform_10, window_bounds = array<i64: 1, 64, 128>}]} {
    %c0 = arith.constant 0 : index
    %c0_0 = arith.constant 0 : index
    %c0_1 = arith.constant 0 : index
    %0 = vector.load %arg1[%c0, %c0_0, %c0_1] : memref<1x64x4xf32, #tpu.memory_space<vmem>>, vector<1x64x4xf32>
    %1 = vector.shape_cast %0 : vector<1x64x4xf32> to vector<64x4xf32>
    %2 = arith.truncf %1 : vector<64x4xf32> to vector<64x4xbf16>
    %cst = arith.constant 0.000000e+00 : f32
    %3 = vector.broadcast %cst : f32 to vector<64x128xf32>
    %c0_2 = arith.constant 0 : index
    %c0_3 = arith.constant 0 : index
    %4 = vector.load %arg12[%c0_2, %c0_3] : memref<64x128xf32, #tpu.memory_space<vmem>>, vector<64x128xf32>
    tpu.vector_store %arg12[%c0_2, %c0_3], %3 {strides = array<i32>} : memref<64x128xf32, #tpu.memory_space<vmem>>, vector<64x128xf32>,
    %c0_4 = arith.constant 0 : index
    %c13 = arith.constant 13 : index
    %c0_5 = arith.constant 0 : index
    %c0_6 = arith.constant 0 : index
    %5 = vector.load %arg3[%c0_4, %c13, %c0_5, %c0_6] : memref<3x27x4x128xbf16, #tpu.memory_space<vmem>>, vector<1x1x4x128xbf16>
    %6 = vector.shape_cast %5 : vector<1x1x4x128xbf16> to vector<4x128xbf16>
    %cst_7 = arith.constant dense<0.000000e+00> : vector<64x128xf32>
    %7 = tpu.matmul %2, %6, %cst_7 {dimension_numbers = #tpu.dot_dimension_numbers<[1], [0], [0], [1], [0, 0, 1, 1], [], []>} : vector<64x4xbf16>, vector<4x128xbf16>, vector<64x128xf32> -> vector<64x128xf32>
    %c0_8 = arith.constant 0 : index
    %c0_9 = arith.constant 0 : index
    %8 = vector.load %arg12[%c0_8, %c0_9] : memref<64x128xf32, #tpu.memory_space<vmem>>, vector<64x128xf32>
    %9 = arith.addf %8, %7 : vector<64x128xf32>
    %c0_10 = arith.constant 0 : index
    %c0_11 = arith.constant 0 : index
    %10 = vector.load %arg12[%c0_10, %c0_11] : memref<64x128xf32, #tpu.memory_space<vmem>>, vector<64x128xf32>
    tpu.vector_store %arg12[%c0_10, %c0_11], %9 {strides = array<i32>} : memref<64x128xf32, #tpu.memory_space<vmem>>, vector<64x128xf32>,
    %c0_12 = arith.constant 0 : index
    %c0_13 = arith.constant 0 : index
    %11 = vector.load %arg12[%c0_12, %c0_13] : memref<64x128xf32, #tpu.memory_space<vmem>>, vector<64x128xf32>
    %c0_14 = arith.constant 0 : index
    %c0_15 = arith.constant 0 : index
    %c0_16 = arith.constant 0 : index
    %12 = vector.load %arg4[%c0_14, %c0_15, %c0_16] : memref<3x1x128xf32, #tpu.memory_space<vmem>>, vector<1x1x128xf32>
    %13 = vector.shape_cast %12 : vector<1x1x128xf32> to vector<1x128xf32>
    %14 = vector.broadcast %13 : vector<1x128xf32> to vector<64x128xf32>
    %15 = arith.addf %11, %14 : vector<64x128xf32>
    %cst_17 = arith.constant 0.000000e+00 : f32
    %16 = vector.broadcast %cst_17 : f32 to vector<64x128xf32>
    %17 = arith.cmpf oge, %15, %16 : vector<64x128xf32>
    %c0_18 = arith.constant 0 : index
    %c0_19 = arith.constant 0 : index
    %c0_20 = arith.constant 0 : index
    %18 = vector.load %arg5[%c0_18, %c0_19, %c0_20] : memref<3x1x128xf32, #tpu.memory_space<vmem>>, vector<1x1x128xf32>
    %19 = vector.shape_cast %18 : vector<1x1x128xf32> to vector<1x128xf32>
    %20 = vector.broadcast %19 : vector<1x128xf32> to vector<64x128xf32>
    %21 = arith.mulf %20, %15 : vector<64x128xf32>
    %22 = arith.select %17, %15, %21 : vector<64x128xi1>, vector<64x128xf32>
    %cst_21 = arith.constant dense<0.000000e+00> : vector<128xf32>
    %23 = vector.multi_reduction <add>, %22, %cst_21 [0] : vector<64x128xf32> to vector<128xf32>
    %24 = vector.shape_cast %23 : vector<128xf32> to vector<1x128xf32>
    %25 = arith.mulf %22, %22 : vector<64x128xf32>
    %cst_22 = arith.constant dense<0.000000e+00> : vector<128xf32>
    %26 = vector.multi_reduction <add>, %25, %cst_22 [0] : vector<64x128xf32> to vector<128xf32>
    %27 = vector.shape_cast %26 : vector<128xf32> to vector<1x128xf32>
    %c0_23 = arith.constant 0 : index
    %c0_24 = arith.constant 0 : index
    %28 = vector.load %arg8[%c0_23, %c0_24] : memref<128x128xf32, #tpu.memory_space<vmem>>, vector<128x128xf32>
    %cst_25 = arith.constant dense<0.000000e+00> : vector<1x128xf32>
    %29 = tpu.matmul %24, %28, %cst_25 {dimension_numbers = #tpu.dot_dimension_numbers<[1], [0], [0], [1], [0, 0, 1, 1], [], []>} : vector<1x128xf32>, vector<128x128xf32>, vector<1x128xf32> -> vector<1x128xf32>
    %c0_26 = arith.constant 0 : index
    %c0_27 = arith.constant 0 : index
    %30 = vector.load %arg8[%c0_26, %c0_27] : memref<128x128xf32, #tpu.memory_space<vmem>>, vector<128x128xf32>
    %cst_28 = arith.constant dense<0.000000e+00> : vector<1x128xf32>
    %31 = tpu.matmul %27, %30, %cst_28 {dimension_numbers = #tpu.dot_dimension_numbers<[1], [0], [0], [1], [0, 0, 1, 1], [], []>} : vector<1x128xf32>, vector<128x128xf32>, vector<1x128xf32> -> vector<1x128xf32>
    %32 = arith.mulf %29, %29 : vector<1x128xf32>
    %33 = arith.subf %31, %32 : vector<1x128xf32>
    %cst_29 = arith.constant 0.000000e+00 : f32
    %34 = vector.broadcast %cst_29 : f32 to vector<1x128xf32>
    %35 = arith.maximumf %33, %34 : vector<1x128xf32>
    %36 = vector.broadcast %29 : vector<1x128xf32> to vector<64x128xf32>
    %37 = arith.subf %22, %36 : vector<64x128xf32>
    %cst_30 = arith.constant 9.99999974E-6 : f32
    %38 = vector.broadcast %cst_30 : f32 to vector<1x128xf32>
    %39 = arith.addf %35, %38 : vector<1x128xf32>
    %40 = math.rsqrt %39 : vector<1x128xf32>
    %41 = vector.broadcast %40 : vector<1x128xf32> to vector<64x128xf32>
    %42 = arith.mulf %37, %41 : vector<64x128xf32>
    %c0_31 = arith.constant 0 : index
    %c0_32 = arith.constant 0 : index
    %c0_33 = arith.constant 0 : index
    %43 = vector.load %arg6[%c0_31, %c0_32, %c0_33] : memref<3x1x128xf32, #tpu.memory_space<vmem>>, vector<1x1x128xf32>
    %44 = vector.shape_cast %43 : vector<1x1x128xf32> to vector<1x128xf32>
    %45 = vector.broadcast %44 : vector<1x128xf32> to vector<64x128xf32>
    %46 = arith.mulf %42, %45 : vector<64x128xf32>
    %c0_34 = arith.constant 0 : index
    %c0_35 = arith.constant 0 : index
    %c0_36 = arith.constant 0 : index
    %47 = vector.load %arg7[%c0_34, %c0_35, %c0_36] : memref<3x1x128xf32, #tpu.memory_space<vmem>>, vector<1x1x128xf32>
    %48 = vector.shape_cast %47 : vector<1x1x128xf32> to vector<1x128xf32>
    %49 = vector.broadcast %48 : vector<1x128xf32> to vector<64x128xf32>
    %50 = arith.addf %46, %49 : vector<64x128xf32>
    %51 = arith.truncf %50 : vector<64x128xf32> to vector<64x128xbf16>
    %c0_37 = arith.constant 0 : index
    %c0_38 = arith.constant 0 : index
    %52 = vector.load %arg13[%c0_37, %c0_38] : memref<64x384xbf16, #tpu.memory_space<vmem>>, vector<64x128xbf16>
    tpu.vector_store %arg13[%c0_37, %c0_38], %51 {strides = array<i32>} : memref<64x384xbf16, #tpu.memory_space<vmem>>, vector<64x128xbf16>,
    %cst_39 = arith.constant 0.000000e+00 : f32
    %53 = vector.broadcast %cst_39 : f32 to vector<64x128xf32>
    %c0_40 = arith.constant 0 : index
    %c0_41 = arith.constant 0 : index
    %54 = vector.load %arg12[%c0_40, %c0_41] : memref<64x128xf32, #tpu.memory_space<vmem>>, vector<64x128xf32>
    tpu.vector_store %arg12[%c0_40, %c0_41], %53 {strides = array<i32>} : memref<64x128xf32, #tpu.memory_space<vmem>>, vector<64x128xf32>,
    %c1 = arith.constant 1 : index
    %c13_42 = arith.constant 13 : index
    %c0_43 = arith.constant 0 : index
    %c0_44 = arith.constant 0 : index
    %55 = vector.load %arg3[%c1, %c13_42, %c0_43, %c0_44] : memref<3x27x4x128xbf16, #tpu.memory_space<vmem>>, vector<1x1x4x128xbf16>
    %56 = vector.shape_cast %55 : vector<1x1x4x128xbf16> to vector<4x128xbf16>
    %cst_45 = arith.constant dense<0.000000e+00> : vector<64x128xf32>
    %57 = tpu.matmul %2, %56, %cst_45 {dimension_numbers = #tpu.dot_dimension_numbers<[1], [0], [0], [1], [0, 0, 1, 1], [], []>} : vector<64x4xbf16>, vector<4x128xbf16>, vector<64x128xf32> -> vector<64x128xf32>
    %c0_46 = arith.constant 0 : index
    %c0_47 = arith.constant 0 : index
    %58 = vector.load %arg12[%c0_46, %c0_47] : memref<64x128xf32, #tpu.memory_space<vmem>>, vector<64x128xf32>
    %59 = arith.addf %58, %57 : vector<64x128xf32>
    %c0_48 = arith.constant 0 : index
    %c0_49 = arith.constant 0 : index
    %60 = vector.load %arg12[%c0_48, %c0_49] : memref<64x128xf32, #tpu.memory_space<vmem>>, vector<64x128xf32>
    tpu.vector_store %arg12[%c0_48, %c0_49], %59 {strides = array<i32>} : memref<64x128xf32, #tpu.memory_space<vmem>>, vector<64x128xf32>,
    %c0_50 = arith.constant 0 : index
    %c0_51 = arith.constant 0 : index
    %61 = vector.load %arg12[%c0_50, %c0_51] : memref<64x128xf32, #tpu.memory_space<vmem>>, vector<64x128xf32>
    %c1_52 = arith.constant 1 : index
    %c0_53 = arith.constant 0 : index
    %c0_54 = arith.constant 0 : index
    %62 = vector.load %arg4[%c1_52, %c0_53, %c0_54] : memref<3x1x128xf32, #tpu.memory_space<vmem>>, vector<1x1x128xf32>
    %63 = vector.shape_cast %62 : vector<1x1x128xf32> to vector<1x128xf32>
    %64 = vector.broadcast %63 : vector<1x128xf32> to vector<64x128xf32>
    %65 = arith.addf %61, %64 : vector<64x128xf32>
    %cst_55 = arith.constant 0.000000e+00 : f32
    %66 = vector.broadcast %cst_55 : f32 to vector<64x128xf32>
    %67 = arith.cmpf oge, %65, %66 : vector<64x128xf32>
    %c1_56 = arith.constant 1 : index
    %c0_57 = arith.constant 0 : index
    %c0_58 = arith.constant 0 : index
    %68 = vector.load %arg5[%c1_56, %c0_57, %c0_58] : memref<3x1x128xf32, #tpu.memory_space<vmem>>, vector<1x1x128xf32>
    %69 = vector.shape_cast %68 : vector<1x1x128xf32> to vector<1x128xf32>
    %70 = vector.broadcast %69 : vector<1x128xf32> to vector<64x128xf32>
    %71 = arith.mulf %70, %65 : vector<64x128xf32>
    %72 = arith.select %67, %65, %71 : vector<64x128xi1>, vector<64x128xf32>
    %cst_59 = arith.constant dense<0.000000e+00> : vector<128xf32>
    %73 = vector.multi_reduction <add>, %72, %cst_59 [0] : vector<64x128xf32> to vector<128xf32>
    %74 = vector.shape_cast %73 : vector<128xf32> to vector<1x128xf32>
    %75 = arith.mulf %72, %72 : vector<64x128xf32>
    %cst_60 = arith.constant dense<0.000000e+00> : vector<128xf32>
    %76 = vector.multi_reduction <add>, %75, %cst_60 [0] : vector<64x128xf32> to vector<128xf32>
    %77 = vector.shape_cast %76 : vector<128xf32> to vector<1x128xf32>
    %c0_61 = arith.constant 0 : index
    %c0_62 = arith.constant 0 : index
    %78 = vector.load %arg8[%c0_61, %c0_62] : memref<128x128xf32, #tpu.memory_space<vmem>>, vector<128x128xf32>
    %cst_63 = arith.constant dense<0.000000e+00> : vector<1x128xf32>
    %79 = tpu.matmul %74, %78, %cst_63 {dimension_numbers = #tpu.dot_dimension_numbers<[1], [0], [0], [1], [0, 0, 1, 1], [], []>} : vector<1x128xf32>, vector<128x128xf32>, vector<1x128xf32> -> vector<1x128xf32>
    %c0_64 = arith.constant 0 : index
    %c0_65 = arith.constant 0 : index
    %80 = vector.load %arg8[%c0_64, %c0_65] : memref<128x128xf32, #tpu.memory_space<vmem>>, vector<128x128xf32>
    %cst_66 = arith.constant dense<0.000000e+00> : vector<1x128xf32>
    %81 = tpu.matmul %77, %80, %cst_66 {dimension_numbers = #tpu.dot_dimension_numbers<[1], [0], [0], [1], [0, 0, 1, 1], [], []>} : vector<1x128xf32>, vector<128x128xf32>, vector<1x128xf32> -> vector<1x128xf32>
    %82 = arith.mulf %79, %79 : vector<1x128xf32>
    %83 = arith.subf %81, %82 : vector<1x128xf32>
    %cst_67 = arith.constant 0.000000e+00 : f32
    %84 = vector.broadcast %cst_67 : f32 to vector<1x128xf32>
    %85 = arith.maximumf %83, %84 : vector<1x128xf32>
    %86 = vector.broadcast %79 : vector<1x128xf32> to vector<64x128xf32>
    %87 = arith.subf %72, %86 : vector<64x128xf32>
    %cst_68 = arith.constant 9.99999974E-6 : f32
    %88 = vector.broadcast %cst_68 : f32 to vector<1x128xf32>
    %89 = arith.addf %85, %88 : vector<1x128xf32>
    %90 = math.rsqrt %89 : vector<1x128xf32>
    %91 = vector.broadcast %90 : vector<1x128xf32> to vector<64x128xf32>
    %92 = arith.mulf %87, %91 : vector<64x128xf32>
    %c1_69 = arith.constant 1 : index
    %c0_70 = arith.constant 0 : index
    %c0_71 = arith.constant 0 : index
    %93 = vector.load %arg6[%c1_69, %c0_70, %c0_71] : memref<3x1x128xf32, #tpu.memory_space<vmem>>, vector<1x1x128xf32>
    %94 = vector.shape_cast %93 : vector<1x1x128xf32> to vector<1x128xf32>
    %95 = vector.broadcast %94 : vector<1x128xf32> to vector<64x128xf32>
    %96 = arith.mulf %92, %95 : vector<64x128xf32>
    %c1_72 = arith.constant 1 : index
    %c0_73 = arith.constant 0 : index
    %c0_74 = arith.constant 0 : index
    %97 = vector.load %arg7[%c1_72, %c0_73, %c0_74] : memref<3x1x128xf32, #tpu.memory_space<vmem>>, vector<1x1x128xf32>
    %98 = vector.shape_cast %97 : vector<1x1x128xf32> to vector<1x128xf32>
    %99 = vector.broadcast %98 : vector<1x128xf32> to vector<64x128xf32>
    %100 = arith.addf %96, %99 : vector<64x128xf32>
    %101 = arith.truncf %100 : vector<64x128xf32> to vector<64x128xbf16>
    %c0_75 = arith.constant 0 : index
    %c128 = arith.constant 128 : index
    %102 = vector.load %arg13[%c0_75, %c128] : memref<64x384xbf16, #tpu.memory_space<vmem>>, vector<64x128xbf16>
    tpu.vector_store %arg13[%c0_75, %c128], %101 {strides = array<i32>} : memref<64x384xbf16, #tpu.memory_space<vmem>>, vector<64x128xbf16>,
    %cst_76 = arith.constant 0.000000e+00 : f32
    %103 = vector.broadcast %cst_76 : f32 to vector<64x128xf32>
    %c0_77 = arith.constant 0 : index
    %c0_78 = arith.constant 0 : index
    %104 = vector.load %arg12[%c0_77, %c0_78] : memref<64x128xf32, #tpu.memory_space<vmem>>, vector<64x128xf32>
    tpu.vector_store %arg12[%c0_77, %c0_78], %103 {strides = array<i32>} : memref<64x128xf32, #tpu.memory_space<vmem>>, vector<64x128xf32>,
    %c2 = arith.constant 2 : index
    %c13_79 = arith.constant 13 : index
    %c0_80 = arith.constant 0 : index
    %c0_81 = arith.constant 0 : index
    %105 = vector.load %arg3[%c2, %c13_79, %c0_80, %c0_81] : memref<3x27x4x128xbf16, #tpu.memory_space<vmem>>, vector<1x1x4x128xbf16>
    %106 = vector.shape_cast %105 : vector<1x1x4x128xbf16> to vector<4x128xbf16>
    %cst_82 = arith.constant dense<0.000000e+00> : vector<64x128xf32>
    %107 = tpu.matmul %2, %106, %cst_82 {dimension_numbers = #tpu.dot_dimension_numbers<[1], [0], [0], [1], [0, 0, 1, 1], [], []>} : vector<64x4xbf16>, vector<4x128xbf16>, vector<64x128xf32> -> vector<64x128xf32>
    %c0_83 = arith.constant 0 : index
    %c0_84 = arith.constant 0 : index
    %108 = vector.load %arg12[%c0_83, %c0_84] : memref<64x128xf32, #tpu.memory_space<vmem>>, vector<64x128xf32>
    %109 = arith.addf %108, %107 : vector<64x128xf32>
    %c0_85 = arith.constant 0 : index
    %c0_86 = arith.constant 0 : index
    %110 = vector.load %arg12[%c0_85, %c0_86] : memref<64x128xf32, #tpu.memory_space<vmem>>, vector<64x128xf32>
    tpu.vector_store %arg12[%c0_85, %c0_86], %109 {strides = array<i32>} : memref<64x128xf32, #tpu.memory_space<vmem>>, vector<64x128xf32>,
    %c0_87 = arith.constant 0 : index
    %c0_88 = arith.constant 0 : index
    %111 = vector.load %arg12[%c0_87, %c0_88] : memref<64x128xf32, #tpu.memory_space<vmem>>, vector<64x128xf32>
    %c2_89 = arith.constant 2 : index
    %c0_90 = arith.constant 0 : index
    %c0_91 = arith.constant 0 : index
    %112 = vector.load %arg4[%c2_89, %c0_90, %c0_91] : memref<3x1x128xf32, #tpu.memory_space<vmem>>, vector<1x1x128xf32>
    %113 = vector.shape_cast %112 : vector<1x1x128xf32> to vector<1x128xf32>
    %114 = vector.broadcast %113 : vector<1x128xf32> to vector<64x128xf32>
    %115 = arith.addf %111, %114 : vector<64x128xf32>
    %cst_92 = arith.constant 0.000000e+00 : f32
    %116 = vector.broadcast %cst_92 : f32 to vector<64x128xf32>
    %117 = arith.cmpf oge, %115, %116 : vector<64x128xf32>
    %c2_93 = arith.constant 2 : index
    %c0_94 = arith.constant 0 : index
    %c0_95 = arith.constant 0 : index
    %118 = vector.load %arg5[%c2_93, %c0_94, %c0_95] : memref<3x1x128xf32, #tpu.memory_space<vmem>>, vector<1x1x128xf32>
    %119 = vector.shape_cast %118 : vector<1x1x128xf32> to vector<1x128xf32>
    %120 = vector.broadcast %119 : vector<1x128xf32> to vector<64x128xf32>
    %121 = arith.mulf %120, %115 : vector<64x128xf32>
    %122 = arith.select %117, %115, %121 : vector<64x128xi1>, vector<64x128xf32>
    %cst_96 = arith.constant dense<0.000000e+00> : vector<128xf32>
    %123 = vector.multi_reduction <add>, %122, %cst_96 [0] : vector<64x128xf32> to vector<128xf32>
    %124 = vector.shape_cast %123 : vector<128xf32> to vector<1x128xf32>
    %125 = arith.mulf %122, %122 : vector<64x128xf32>
    %cst_97 = arith.constant dense<0.000000e+00> : vector<128xf32>
    %126 = vector.multi_reduction <add>, %125, %cst_97 [0] : vector<64x128xf32> to vector<128xf32>
    %127 = vector.shape_cast %126 : vector<128xf32> to vector<1x128xf32>
    %c0_98 = arith.constant 0 : index
    %c0_99 = arith.constant 0 : index
    %128 = vector.load %arg8[%c0_98, %c0_99] : memref<128x128xf32, #tpu.memory_space<vmem>>, vector<128x128xf32>
    %cst_100 = arith.constant dense<0.000000e+00> : vector<1x128xf32>
    %129 = tpu.matmul %124, %128, %cst_100 {dimension_numbers = #tpu.dot_dimension_numbers<[1], [0], [0], [1], [0, 0, 1, 1], [], []>} : vector<1x128xf32>, vector<128x128xf32>, vector<1x128xf32> -> vector<1x128xf32>
    %c0_101 = arith.constant 0 : index
    %c0_102 = arith.constant 0 : index
    %130 = vector.load %arg8[%c0_101, %c0_102] : memref<128x128xf32, #tpu.memory_space<vmem>>, vector<128x128xf32>
    %cst_103 = arith.constant dense<0.000000e+00> : vector<1x128xf32>
    %131 = tpu.matmul %127, %130, %cst_103 {dimension_numbers = #tpu.dot_dimension_numbers<[1], [0], [0], [1], [0, 0, 1, 1], [], []>} : vector<1x128xf32>, vector<128x128xf32>, vector<1x128xf32> -> vector<1x128xf32>
    %132 = arith.mulf %129, %129 : vector<1x128xf32>
    %133 = arith.subf %131, %132 : vector<1x128xf32>
    %cst_104 = arith.constant 0.000000e+00 : f32
    %134 = vector.broadcast %cst_104 : f32 to vector<1x128xf32>
    %135 = arith.maximumf %133, %134 : vector<1x128xf32>
    %136 = vector.broadcast %129 : vector<1x128xf32> to vector<64x128xf32>
    %137 = arith.subf %122, %136 : vector<64x128xf32>
    %cst_105 = arith.constant 9.99999974E-6 : f32
    %138 = vector.broadcast %cst_105 : f32 to vector<1x128xf32>
    %139 = arith.addf %135, %138 : vector<1x128xf32>
    %140 = math.rsqrt %139 : vector<1x128xf32>
    %141 = vector.broadcast %140 : vector<1x128xf32> to vector<64x128xf32>
    %142 = arith.mulf %137, %141 : vector<64x128xf32>
    %c2_106 = arith.constant 2 : index
    %c0_107 = arith.constant 0 : index
    %c0_108 = arith.constant 0 : index
    %143 = vector.load %arg6[%c2_106, %c0_107, %c0_108] : memref<3x1x128xf32, #tpu.memory_space<vmem>>, vector<1x1x128xf32>
    %144 = vector.shape_cast %143 : vector<1x1x128xf32> to vector<1x128xf32>
    %145 = vector.broadcast %144 : vector<1x128xf32> to vector<64x128xf32>
    %146 = arith.mulf %142, %145 : vector<64x128xf32>
    %c2_109 = arith.constant 2 : index
    %c0_110 = arith.constant 0 : index
    %c0_111 = arith.constant 0 : index
    %147 = vector.load %arg7[%c2_109, %c0_110, %c0_111] : memref<3x1x128xf32, #tpu.memory_space<vmem>>, vector<1x1x128xf32>
    %148 = vector.shape_cast %147 : vector<1x1x128xf32> to vector<1x128xf32>
    %149 = vector.broadcast %148 : vector<1x128xf32> to vector<64x128xf32>
    %150 = arith.addf %146, %149 : vector<64x128xf32>
    %151 = arith.truncf %150 : vector<64x128xf32> to vector<64x128xbf16>
    %c0_112 = arith.constant 0 : index
    %c256 = arith.constant 256 : index
    %152 = vector.load %arg13[%c0_112, %c256] : memref<64x384xbf16, #tpu.memory_space<vmem>>, vector<64x128xbf16>
    tpu.vector_store %arg13[%c0_112, %c256], %151 {strides = array<i32>} : memref<64x384xbf16, #tpu.memory_space<vmem>>, vector<64x128xbf16>,
    %c0_113 = arith.constant 0 : index
    %c0_114 = arith.constant 0 : index
    %153 = vector.load %arg13[%c0_113, %c0_114] : memref<64x384xbf16, #tpu.memory_space<vmem>>, vector<64x384xbf16>
    %c0_115 = arith.constant 0 : index
    %c0_116 = arith.constant 0 : index
    %154 = vector.load %arg9[%c0_115, %c0_116] : memref<384x128xbf16, #tpu.memory_space<vmem>>, vector<384x128xbf16>
    %cst_117 = arith.constant dense<0.000000e+00> : vector<64x128xf32>
    %155 = tpu.matmul %153, %154, %cst_117 {dimension_numbers = #tpu.dot_dimension_numbers<[1], [0], [0], [1], [0, 0, 1, 1], [], []>} : vector<64x384xbf16>, vector<384x128xbf16>, vector<64x128xf32> -> vector<64x128xf32>
    %c0_118 = arith.constant 0 : index
    %c0_119 = arith.constant 0 : index
    %156 = vector.load %arg10[%c0_118, %c0_119] : memref<1x128xf32, #tpu.memory_space<vmem>>, vector<1x128xf32>
    %157 = vector.broadcast %156 : vector<1x128xf32> to vector<64x128xf32>
    %158 = arith.addf %155, %157 : vector<64x128xf32>
    %c0_120 = arith.constant 0 : index
    %c0_121 = arith.constant 0 : index
    %c0_122 = arith.constant 0 : index
    %159 = vector.load %arg11[%c0_120, %c0_121, %c0_122] : memref<1x64x128xf32, #tpu.memory_space<vmem>>, vector<1x64x128xf32>
    %160 = vector.shape_cast %159 : vector<1x64x128xf32> to vector<64x128xf32>
    %161 = vector.shape_cast %158 : vector<64x128xf32> to vector<1x64x128xf32>
    tpu.vector_store %arg11[%c0_120, %c0_121, %c0_122], %161 {strides = array<i32>} : memref<1x64x128xf32, #tpu.memory_space<vmem>>, vector<1x64x128xf32>,
    return
  }
  func.func @transform_0(%arg0: i32) -> (i32, i32, i32) {
    %c0_i32 = arith.constant 0 : i32
    %c0_i32_0 = arith.constant 0 : i32
    %c0_i32_1 = arith.constant 0 : i32
    return %arg0, %c0_i32, %c0_i32_0 : i32, i32, i32
  }
  func.func @transform_1(%arg0: i32) -> (i32, i32, i32, i32) {
    %c0_i32 = arith.constant 0 : i32
    %c0_i32_0 = arith.constant 0 : i32
    %c0_i32_1 = arith.constant 0 : i32
    %c0_i32_2 = arith.constant 0 : i32
    %c0_i32_3 = arith.constant 0 : i32
    return %c0_i32, %c0_i32_0, %c0_i32_1, %c0_i32_2 : i32, i32, i32, i32
  }
  func.func @transform_2(%arg0: i32) -> (i32, i32, i32, i32) {
    %c0_i32 = arith.constant 0 : i32
    %c0_i32_0 = arith.constant 0 : i32
    %c0_i32_1 = arith.constant 0 : i32
    %c0_i32_2 = arith.constant 0 : i32
    %c0_i32_3 = arith.constant 0 : i32
    return %c0_i32, %c0_i32_0, %c0_i32_1, %c0_i32_2 : i32, i32, i32, i32
  }
  func.func @transform_3(%arg0: i32) -> (i32, i32, i32) {
    %c0_i32 = arith.constant 0 : i32
    %c0_i32_0 = arith.constant 0 : i32
    %c0_i32_1 = arith.constant 0 : i32
    %c0_i32_2 = arith.constant 0 : i32
    return %c0_i32, %c0_i32_0, %c0_i32_1 : i32, i32, i32
  }
  func.func @transform_4(%arg0: i32) -> (i32, i32, i32) {
    %c0_i32 = arith.constant 0 : i32
    %c0_i32_0 = arith.constant 0 : i32
    %c0_i32_1 = arith.constant 0 : i32
    %c0_i32_2 = arith.constant 0 : i32
    return %c0_i32, %c0_i32_0, %c0_i32_1 : i32, i32, i32
  }
  func.func @transform_5(%arg0: i32) -> (i32, i32, i32) {
    %c0_i32 = arith.constant 0 : i32
    %c0_i32_0 = arith.constant 0 : i32
    %c0_i32_1 = arith.constant 0 : i32
    %c0_i32_2 = arith.constant 0 : i32
    return %c0_i32, %c0_i32_0, %c0_i32_1 : i32, i32, i32
  }
  func.func @transform_6(%arg0: i32) -> (i32, i32, i32) {
    %c0_i32 = arith.constant 0 : i32
    %c0_i32_0 = arith.constant 0 : i32
    %c0_i32_1 = arith.constant 0 : i32
    %c0_i32_2 = arith.constant 0 : i32
    return %c0_i32, %c0_i32_0, %c0_i32_1 : i32, i32, i32
  }
  func.func @transform_7(%arg0: i32) -> (i32, i32) {
    %c0_i32 = arith.constant 0 : i32
    %c0_i32_0 = arith.constant 0 : i32
    %c0_i32_1 = arith.constant 0 : i32
    return %c0_i32, %c0_i32_0 : i32, i32
  }
  func.func @transform_8(%arg0: i32) -> (i32, i32) {
    %c0_i32 = arith.constant 0 : i32
    %c0_i32_0 = arith.constant 0 : i32
    %c0_i32_1 = arith.constant 0 : i32
    return %c0_i32, %c0_i32_0 : i32, i32
  }
  func.func @transform_9(%arg0: i32) -> (i32, i32) {
    %c0_i32 = arith.constant 0 : i32
    %c0_i32_0 = arith.constant 0 : i32
    %c0_i32_1 = arith.constant 0 : i32
    return %c0_i32, %c0_i32_0 : i32, i32
  }
  func.func @transform_10(%arg0: i32) -> (i32, i32, i32) {
    %c0_i32 = arith.constant 0 : i32
    %c0_i32_0 = arith.constant 0 : i32
    %c0_i32_1 = arith.constant 0 : i32
    return %arg0, %c0_i32, %c0_i32_0 : i32, i32, i32
  }
}

</mosaic_0001>

<bundles_post_ra>
// kernel: aspp_forward.2
= control target key start
LH: loop header
LB: loop body
LE: loop exit
PB: predicated region body
PF: predicated region fallthrough
CT: control target
= control target key end

     0   :  { %s160_s0 = inlined_call_operand.vmem [shape: f32[27,8,128], index: 0, kind: input, shape index: {}]   ;;  %s161_s1 = inlined_call_operand.vmem [shape: f32[8,128], index: 1, kind: output, shape index: {}]  }
   0x1   :  { %v8_v0 = vld [vmem:[%s160_s0] sm:$0xff]  ;;  %v9_v1 = vld [vmem:[%s160_s0 + $0x8] sm:$0xff]  ;;  %v10_v2 = vld [vmem:[%s160_s0 + $0x10] sm:$0xff] }
   0x2   :  { %v11_v3 = vld [vmem:[%s160_s0 + $0x18] sm:$0xff]  ;;  %v12_v4 = vld [vmem:[%s160_s0 + $0x20] sm:$0xff]  ;;  %v13_v5 = vld [vmem:[%s160_s0 + $0x28] sm:$0xff] }
   0x3   :  { %v14_v6 = vld [vmem:[%s160_s0 + $0x30] sm:$0xff]  ;;  %v15_v7 = vld [vmem:[%s160_s0 + $0x38] sm:$0xff]  ;;  %v16_v8 = vld [vmem:[%s160_s0 + $0x40] sm:$0xff]  ;;  %v35_v9 = vmax.f32 %v8_v0, %v12_v4  ;;  %v36_v10 = vmax.f32 %v9_v1, %v13_v5 }
   0x4   :  { %v17_v11 = vld [vmem:[%s160_s0 + $0x48] sm:$0xff]  ;;  %v18_v12 = vld [vmem:[%s160_s0 + $0x50] sm:$0xff]  ;;  %v19_v13 = vld [vmem:[%s160_s0 + $0x58] sm:$0xff]  ;;  %v37_v14 = vmax.f32 %v10_v2, %v14_v6  ;;  %v38_v15 = vmax.f32 %v11_v3, %v15_v7 }
   0x5   :  { %v20_v16 = vld [vmem:[%s160_s0 + $0x60] sm:$0xff]  ;;  %v21_v17 = vld [vmem:[%s160_s0 + $0x68] sm:$0xff]  ;;  %v22_v18 = vld [vmem:[%s160_s0 + $0x70] sm:$0xff]  ;;  %v39_v19 = vmax.f32 %v35_v9, %v16_v8  ;;  %v40_v20 = vmax.f32 %v36_v10, %v17_v11 }
   0x6   :  { %v23_v21 = vld [vmem:[%s160_s0 + $0x78] sm:$0xff]  ;;  %v24_v22 = vld [vmem:[%s160_s0 + $0x80] sm:$0xff]  ;;  %v25_v23 = vld [vmem:[%s160_s0 + $0x88] sm:$0xff]  ;;  %v41_v24 = vmax.f32 %v37_v14, %v18_v12  ;;  %v42_v25 = vmax.f32 %v38_v15, %v19_v13 }
   0x7   :  { %v26_v26 = vld [vmem:[%s160_s0 + $0x90] sm:$0xff]  ;;  %v27_v27 = vld [vmem:[%s160_s0 + $0x98] sm:$0xff]  ;;  %v43_v28 = vmax.f32 %v39_v19, %v20_v16  ;;  %v44_v29 = vmax.f32 %v40_v20, %v21_v17  ;;  %v28_v30 = vld [vmem:[%s160_s0 + $0xa0] sm:$0xff] }
   0x8   :  { %v29_v31 = vld [vmem:[%s160_s0 + $0xa8] sm:$0xff]  ;;  %v45_v32 = vmax.f32 %v41_v24, %v22_v18  ;;  %v46_v33 = vmax.f32 %v42_v25, %v23_v21  ;;  %v30_v34 = vld [vmem:[%s160_s0 + $0xb0] sm:$0xff]  ;;  %v31_v35 = vld [vmem:[%s160_s0 + $0xb8] sm:$0xff] }
   0x9   :  { %v47_v36 = vmax.f32 %v43_v28, %v24_v22  ;;  %v48_v37 = vmax.f32 %v44_v29, %v25_v23  ;;  %v32_v38 = vld [vmem:[%s160_s0 + $0xc0] sm:$0xff]  ;;  %v33_v39 = vld [vmem:[%s160_s0 + $0xc8] sm:$0xff]  ;;  %v34_v42 = vld [vmem:[%s160_s0 + $0xd0] sm:$0xff] }
   0xa   :  { %v49_v40 = vmax.f32 %v45_v32, %v26_v26  ;;  %v50_v41 = vmax.f32 %v46_v33, %v27_v27 }
   0xb   :  { %v51_v43 = vmax.f32 %v47_v36, %v28_v30  ;;  %v52_v44 = vmax.f32 %v48_v37, %v29_v31 }
   0xc   :  { %v53_v45 = vmax.f32 %v49_v40, %v30_v34  ;;  %v54_v46 = vmax.f32 %v50_v41, %v31_v35 }
   0xd   :  { %v55_v47 = vmax.f32 %v51_v43, %v32_v38  ;;  %v56_v48 = vmax.f32 %v52_v44, %v33_v39 }
   0xe   :  { %v57_v49 = vmax.f32 %v53_v45, %v34_v42 }
   0xf   :  { %v58_v50 = vmax.f32 %v55_v47, %v56_v48 }
  0x10   :  { %v59_v51 = vmax.f32 %v57_v49, %v54_v46 }
  0x12   :  { %v60_v52 = vmax.f32 %v58_v50, %v59_v51 }
  0x14   :  { %61 = vst [vmem:[%s161_s1] sm:$0xff] %v60_v52 }

// kernel: aspp_forward.3
= control target key start
LH: loop header
LB: loop body
LE: loop exit
PB: predicated region body
PF: predicated region fallthrough
CT: control target
= control target key end

     0   :  { %15 = vsyncpa [#allocation5], 0  ;;  %s3590_s0 = inlined_call_operand.vmem [shape: f32[2,64,4], index: 0, kind: input, shape index: {}]   ;;  %s3591_s1 = inlined_call_operand.vmem [shape: f32[3,27,64,1], index: 1, kind: input, shape index: {}]   ;;  %s3592_s2 = inlined_call_operand.vmem [shape: bf16[3,27,4,128], index: 2, kind: input, shape index: {}]   ;;  %s3593_s3 = inlined_call_operand.vmem [shape: f32[3,1,128], index: 3, kind: input, shape index: {}]   ;;  %s3594_s4 = inlined_call_operand.vmem [shape: f32[3,1,128], index: 4, kind: input, shape index: {}]   ;;  %s3595_s5 = inlined_call_operand.vmem [shape: f32[3,1,128], index: 5, kind: input, shape index: {}]   ;;  %s3596_s6 = inlined_call_operand.vmem [shape: f32[3,1,128], index: 6, kind: input, shape index: {}]   ;;  %s3597_s7 = inlined_call_operand.vmem [shape: f32[128,128], index: 7, kind: input, shape index: {}]   ;;  %s3598_s8 = inlined_call_operand.vmem [shape: bf16[384,128], index: 8, kind: input, shape index: {}]   ;;  %s3599_s9 = inlined_call_operand.vmem [shape: f32[1,128], index: 9, kind: input, shape index: {}]   ;;  %s3600_s10 = inlined_call_operand.hbm [shape: f32[2,64,128], index: 10, kind: output, shape index: {}]  }
   0x1   :  { %17 = vsyncpa [#allocation5 + $0x1], 0  ;;  %s2910_s12 = smov 0   ;;  %s2912_s13 = smov 0  }
   0x2   :  { %s2914_s14 = smov 0   ;;  %s2916_s15 = smov 0  }
   0x3 LB: > { %s2931_s16 = sadd.s32 4294967295, %s2847_s15   ;;  %s2057_s17 = sadd.s32 4294967294, %s2847_s15   ;;  %s2847_s15 = sphi %s2916_s15, %s3606_s15   ;;  %s2843_s14 = sphi %s2914_s14, %s3605_s14   ;;  %s2839_s13 = sphi %s2912_s13, %s3604_s13   ;;  %s2835_s12 = sphi %s2910_s12, %s3603_s12  }
   0x4   : > { %s2935_s18 = sadd.s32 1, %s2847_s15   ;;  %s245_s19 = sadd.s32 1, %s2843_s14 }
   0x5   : > { %s242_s20 = ssub.s32 %s2847_s15, %s2935_s18  ;;  %p255_p0 = scmp.ne.s32.totalorder %s2843_s14, %s2839_s13 }
   0x6   : > { %p243_p1 = scmp.eq.s32.totalorder %s242_s20, 0  ;;  %p256_p2 = scmp.eq.s32.totalorder %s2931_s16, 1 }
   0x7   : > { %p261_p3 = scmp.ne.s32.totalorder %s2839_s13, %s2835_s12  ;;  %p262_p4 = scmp.eq.s32.totalorder %s2057_s17, 1 }
   0x8   : > { %s2946_s21 = scalar_select %p243_p1, %s2843_s14, %s245_s19  }
   0x9   : > { %p2948_p5 = por %p256_p2, %p255_p0  ;;  %p2952_p6 = por %p262_p4, %p261_p3 }
   0xa   : > { %p2060_p7 = scmp.ge.s32.totalorder %s2847_s15, 1  ;;  %p315_p8 = scmp.lt.s32.totalorder %s2847_s15, 3 }
   0xc   : > { %p316_p9 = pnand %p2060_p7, %p315_p8 }
   0xd   : > { %v2064_v0 = vld [vmem:[%s3592_s2 + $0x1a] sm:$0x3] (!%p316_p9)  ;;  %vm394_vm0 = vcmask (!%p316_p9), 1041408   ;;  %p353_p10 = scmp.lt.s32.totalorder (!%p316_p9), %s2931_s16, 1  ;;  %vm381_vm1 = vcmask (!%p316_p9), 31744   ;;  %v575_v14 = vld [vmem:[%s3597_s7] sm:$0xff] (!%p316_p9) }
   0xe   : > { %319 = sbr.rel (%p316_p9) target bundleno = 1263 (0x4ef), region = 60  ;;  %2708 = vmatprep.subr.msk.bf16.mxu0 (!%p316_p9), %vm394_vm0, %v2064_v0  ;;  %v396_v1 = vsel (!%p316_p9), %vm394_vm0, %v2064_v0, 0  ;;  %v576_v15 = vld [vmem:[%s3597_s7 + $0x8] sm:$0xff] (!%p316_p9)  ;;  %v2849_v17 = vmov (!%p316_p9), 0.0|0.0   ;;  %v577_v18 = vld [vmem:[%s3597_s7 + $0x10] sm:$0xff] (!%p316_p9)  ;;  %v578_v19 = vld [vmem:[%s3597_s7 + $0x18] sm:$0xff] (!%p316_p9) }
   0xf   : > { %2301 = vmatpush3.bf16.msra.mxu0 (!%p316_p9), %v396_v1  ;;  %v2990_v16 = vpack.c.bf16 (!%p316_p9), %v576_v15, %v575_v14  ;;  %2564 = vmatprep.subr.bf16.mxu1 (!%p316_p9), %v2849_v17  ;;  %v3004_v20 = vpack.c.bf16 (!%p316_p9), %v578_v19, %v577_v18  ;;  %v579_v21 = vld [vmem:[%s3597_s7 + $0x20] sm:$0xff] (!%p316_p9)  ;;  %v580_v22 = vld [vmem:[%s3597_s7 + $0x28] sm:$0xff] (!%p316_p9)  ;;  %v581_v24 = vld [vmem:[%s3597_s7 + $0x30] sm:$0xff] (!%p316_p9)  ;;  %vm2850_vm2 = vmmov (!%p316_p9), 0   ;;  %v2851_v39 = vmov (!%p316_p9), 0.0   ;;  %s350_s30 = sand.u32 (!%p316_p9), 1, %s2839_s13  }
  0x10   : > { %2588 = vmatprep.subr.bf16.mxu0 (!%p316_p9), %v2849_v17  ;;  %v3016_v23 = vpack.c.bf16 (!%p316_p9), %v580_v22, %v579_v21  ;;  %v582_v25 = vld [vmem:[%s3597_s7 + $0x38] sm:$0xff] (!%p316_p9)  ;;  %v583_v27 = vld [vmem:[%s3597_s7 + $0x40] sm:$0xff] (!%p316_p9)  ;;  %v584_v28 = vld [vmem:[%s3597_s7 + $0x48] sm:$0xff] (!%p316_p9)  ;;  %2342 = vmatprep.mubr.msk.f32.mxu1 (!%p316_p9), %vm2850_vm2, %v2851_v39  ;;  %s2061_s11 = sshll.u32 (!%p316_p9), %s350_s30, 6  ;;  %s2130_s24 = sshll.u32 (!%p316_p9), %s2931_s16, 10 }
  0x11   : > { %2566 = vmatpush3.bf16.msra.mxu1 (!%p316_p9), %v2990_v16  ;;  %v3028_v26 = vpack.c.bf16 (!%p316_p9), %v582_v25, %v581_v24  ;;  %v3040_v29 = vpack.c.bf16 (!%p316_p9), %v584_v28, %v583_v27  ;;  %v585_v30 = vld [vmem:[%s3597_s7 + $0x50] sm:$0xff] (!%p316_p9)  ;;  %v586_v31 = vld [vmem:[%s3597_s7 + $0x58] sm:$0xff] (!%p316_p9)  ;;  %v587_v33 = vld [vmem:[%s3597_s7 + $0x60] sm:$0xff] (!%p316_p9)  ;;  %s352_s20 = scalar_lea.vmem (!%p316_p9), [#allocation4], %s2061_s11  ;;  %s3543_s1 = scalar_lea.hbm (!%p316_p9), %s3600_s10, %s2130_s24 }
  0x12   : > { %2567 = vmatprep.subr.bf16.mxu1 (!%p316_p9), %v2849_v17  ;;  %v3052_v32 = vpack.c.bf16 (!%p316_p9), %v586_v31, %v585_v30  ;;  %v588_v34 = vld [vmem:[%s3597_s7 + $0x68] sm:$0xff] (!%p316_p9)  ;;  %v589_v36 = vld [vmem:[%s3597_s7 + $0x70] sm:$0xff] (!%p316_p9)  ;;  %v590_v37 = vld [vmem:[%s3597_s7 + $0x78] sm:$0xff] (!%p316_p9)  ;;  %s1995_s25 = sshll.u32 (!%p316_p9), %s352_s20, 4  ;;  %s3545_s25 = int_to_ptr.vmem [resolvable:$true] %s1995_s25 }
  0x13   : > { %v3064_v35 = vpack.c.bf16 (!%p316_p9), %v588_v34, %v587_v33  ;;  %v3074_v38 = vpack.c.bf16 (!%p316_p9), %v590_v37, %v589_v36  ;;  %v3088_v40 = vld [vmem:[%s3592_s2 + $0x50] sm:$0x3] (!%p316_p9)  ;;  %v2069_v41 = vld [vmem:[%s3593_s3] ss:$0 sm:$0xff] (!%p316_p9)  ;;  %s2785_s28 = scalar_lea.vmem (!%p316_p9), %s3545_s25, 1024 }
  0x14   : > { %v2070_v44 = vld [vmem:[%s3594_s4] ss:$0 sm:$0xff] (!%p316_p9)  ;;  %p2786_p11 = scmp.ne.s32.totalorder (!%p316_p9), %s3545_s25, %s2785_s28 }
  0x15   : > { %s354_s26 = scalar_select %p353_p10, %s2931_s16, 1  ;;  %2569 = vmatpush3.bf16.msra.mxu1 %v3004_v20 }
  0x16   : > { %2570 = vmatprep.subr.bf16.mxu1 %v2849_v17  ;;  %s3549_s16 = scalar_lea.sflag [#allocation5], %s350_s30  ;;  %p2787_p12 = pnand %p2786_p11, %p2948_p5 }
  0x17   : > { %s2129_s27 = sshll.u32 %s354_s26, 6 }
  0x18   : > { %s357_s29 = scalar_lea.vmem %s3590_s0, %s2129_s27  ;;  %p2788_p13 = pneg %p2787_p12 }
  0x19   : > { %v359_v2 = vld [vmem:[%s357_s29] sm:$0xff]  ;;  %v360_v3 = vld [vmem:[%s357_s29 + $0x8] sm:$0xff]  ;;  %v361_v4 = vld [vmem:[%s357_s29 + $0x10] sm:$0xff]  ;;  %2572 = vmatpush3.bf16.msra.mxu1 %v3016_v23 }
  0x1a   : > { %v2968_v5 = vpack.c.bf16 %v360_v3, %v359_v2  ;;  %v362_v6 = vld [vmem:[%s357_s29 + $0x18] sm:$0xff]  ;;  %v363_v7 = vld [vmem:[%s357_s29 + $0x20] sm:$0xff]  ;;  %v364_v8 = vld [vmem:[%s357_s29 + $0x28] sm:$0xff]  ;;  %2573 = vmatprep.subr.bf16.mxu1 %v2849_v17 }
  0x1b   : > { %v2970_v9 = vpack.c.bf16 %v362_v6, %v361_v4  ;;  %v2972_v10 = vpack.c.bf16 %v364_v8, %v363_v7  ;;  %v365_v11 = vld [vmem:[%s357_s29 + $0x30] sm:$0xff]  ;;  %v366_v12 = vld [vmem:[%s357_s29 + $0x38] sm:$0xff]  ;;  %s2852_s29 = smov [#allocation4]  }
  0x1c   : > { %2302 = vmatprep.mubr.msk.bf16.mxu0 %vm381_vm1, %v2968_v5  ;;  %v2980_v13 = vpack.c.bf16 %v366_v12, %v365_v11  ;;  %s2789_s11 = sshll.u32 %s2852_s29, 4  ;;  %s2790_s11 = int_to_ptr.vmem [resolvable:$false] %s2789_s11 }
  0x1d   : > { %2303 = vmatmul.mubr.msk.bf16.vlgmr.msra.gmra.mrb[0].mxu0 %vm381_vm1, %v2970_v9  ;;  %2575 = vmatpush3.bf16.msra.mxu1 %v3028_v26  ;;  %s2791_s17 = scalar_lea.vmem %s2790_s11, 2048  ;;  %p2792_p0 = scmp.lt.s32.totalorder %s3545_s25, %s2790_s11 }
  0x1e   : > { %2306 = vmatprep.mubr.msk.bf16.mxu0 %vm381_vm1, %v2972_v10  ;;  %2590 = vmatpush3.bf16.msra.mxu0 %v2990_v16  ;;  %p2793_p1 = scmp.lt.s32.totalorder %s2791_s17, %s2785_s28 }
  0x1f   : > { %2591 = vmatprep.subr.bf16.mxu0 %v2849_v17  ;;  %2576 = vmatprep.subr.bf16.mxu1 %v2849_v17 }
  0x20   : > { %p2794_p2 = por %p2793_p1, %p2792_p0 }
  0x21   : > { %2578 = vmatpush3.bf16.msra.mxu1 %v3040_v29 }
  0x22   : > { %2593 = vmatpush3.bf16.msra.mxu0 %v3004_v20  ;;  %2579 = vmatprep.subr.bf16.mxu1 %v2849_v17  ;;  %p2795_p3 = pnand %p2794_p2, %p2788_p13 }
  0x23   : > { %2594 = vmatprep.subr.bf16.mxu0 %v2849_v17 }
  0x25   : > { %2307 = vmatmul.mubr.msk.bf16.gmra.mrb[4].mxu0 %vm381_vm1, %v2980_v13  ;;  %2581 = vmatpush3.bf16.msra.mxu1 %v3052_v32 }
  0x26   : > { %2596 = vmatpush3.bf16.msra.mxu0 %v3016_v23  ;;  %2582 = vmatprep.subr.bf16.mxu1 %v2849_v17 }
  0x27   : > { %2597 = vmatprep.subr.bf16.mxu0 %v2849_v17  ;;  %2377 = vmatprep.mubr.msk.f32.mxu0 %vm2850_vm2, %v2851_v39 }
  0x29   : > { %2584 = vmatpush3.bf16.msra.mxu1 %v3064_v35 }
  0x2a   : > { %2599 = vmatpush3.bf16.msra.mxu0 %v3028_v26  ;;  %2585 = vmatprep.subr.bf16.mxu1 %v2849_v17 }
  0x2b   : > { %2600 = vmatprep.subr.bf16.mxu0 %v2849_v17 }
  0x2d   : > { %2587 = vmatpush3.bf16.msra.mxu1 %v3074_v38 }
  0x2e   : > { %2602 = vmatpush3.bf16.msra.mxu0 %v3040_v29  ;;  %2636 = vmatprep.subr.bf16.mxu1 %v2849_v17 }
  0x2f   : > { %2603 = vmatprep.subr.bf16.mxu0 %v2849_v17 }
  0x32   : > { %2605 = vmatpush3.bf16.msra.mxu0 %v3052_v32 }
  0x33   : > { %2606 = vmatprep.subr.bf16.mxu0 %v2849_v17 }
  0x36   : > { %2608 = vmatpush3.bf16.msra.mxu0 %v3064_v35 }
  0x37   : > { %2609 = vmatprep.subr.bf16.mxu0 %v2849_v17 }
  0x3a   : > { %2611 = vmatpush3.bf16.msra.mxu0 %v3074_v38 }
  0x3b   : > { %2709 = vmatprep.subr.msk.bf16.mxu0 %vm394_vm0, %v3088_v40 }
  0xf0   : > { %v2304_v42 = vpop.f32.mrb[0].mxu0 }
  0xf1   : > { %v504_v43 = vadd.f32 %v2304_v42, %v2069_v41  ;;  %v432_v45 = vpop.f32.mrb[1].mxu0 }
  0xf2   : > { %v502_v46 = vadd.f32 %v2069_v41, %v432_v45  ;;  %v2305_v47 = vpop.f32.mrb[2].mxu0 }
  0xf3   : > { %v505_v48 = vadd.f32 %v2305_v47, %v2069_v41  ;;  %v435_v49 = vpop.f32.mrb[3].mxu0  ;;  %v527_v50 = vmul.f32 %v2070_v44, %v504_v43  ;;  %vm512_vm4 = vcmp.ge.f32.partialorder %v504_v43, 0.0 }
  0xf4   : > { %vm510_vm3 = vcmp.ge.f32.partialorder %v502_v46, 0.0  ;;  %v525_v51 = vmul.f32 %v2070_v44, %v502_v46  ;;  %v503_v52 = vadd.f32 %v2069_v41, %v435_v49 }
  0xf5   : > { %v528_v54 = vmul.f32 %v2070_v44, %v505_v48  ;;  %vm513_vm6 = vcmp.ge.f32.partialorder %v505_v48, 0.0  ;;  %v3100_v56 = vsel %vm512_vm4, %v504_v43, %v527_v50 }
  0xf6   : > { %v3098_v53 = vsel %vm510_vm3, %v502_v46, %v525_v51  ;;  %vm511_vm5 = vcmp.ge.f32.partialorder %v503_v52, 0.0  ;;  %v526_v55 = vmul.f32 %v2070_v44, %v503_v52  ;;  %v556_v3 = vmul.f32 %v3100_v56, %v3100_v56 }
  0xf7   : > { %v554_v59 = vmul.f32 %v3098_v53, %v3098_v53  ;;  %v3110_v63 = vsel %vm513_vm6, %v505_v48, %v528_v54 }
  0xf8   : > { %v3102_v57 = vsel %vm511_vm5, %v503_v52, %v526_v55  ;;  %v2308_v58 = vpop.f32.mrb[4].mxu0  ;;  %v557_v14 = vmul.f32 %v3110_v63, %v3110_v63 }
  0xf9   : > { %v541_v60 = vadd.f32 %v3102_v57, %v3098_v53  ;;  %v555_v61 = vmul.f32 %v3102_v57, %v3102_v57  ;;  %v448_v62 = vpop.f32.mrb[5].mxu0  ;;  %v508_v0 = vadd.f32 %v2308_v58, %v2069_v41 }
  0xfa   : > { %v506_v1 = vadd.f32 %v2069_v41, %v448_v62  ;;  %v2309_v2 = vpop.f32.mrb[6].mxu0 }
  0xfb   : > { %v542_v4 = vadd.f32 %v541_v60, %v3100_v56  ;;  %v562_v6 = vadd.f32 %v555_v61, %v554_v59  ;;  %v451_v7 = vpop.f32.mrb[7].mxu0  ;;  %v509_v11 = vadd.f32 %v2309_v2, %v2069_v41  ;;  %vm516_vm8 = vcmp.ge.f32.partialorder %v508_v0, 0.0 }
  0xfc   : > { %vm514_vm7 = vcmp.ge.f32.partialorder %v506_v1, 0.0  ;;  %v529_v8 = vmul.f32 %v2070_v44, %v506_v1  ;;  %v507_v12 = vadd.f32 %v2069_v41, %v451_v7  ;;  %v531_v19 = vmul.f32 %v2070_v44, %v508_v0 }
  0xfd   : > { %v563_v15 = vadd.f32 %v562_v6, %v556_v3  ;;  %v543_v18 = vadd.f32 %v542_v4, %v3110_v63  ;;  %v532_v27 = vmul.f32 %v2070_v44, %v509_v11  ;;  %vm517_vm10 = vcmp.ge.f32.partialorder %v509_v11, 0.0 }
  0xfe   : > { %v3118_v21 = vsel %vm514_vm7, %v506_v1, %v529_v8  ;;  %vm515_vm9 = vcmp.ge.f32.partialorder %v507_v12, 0.0  ;;  %v530_v28 = vmul.f32 %v2070_v44, %v507_v12  ;;  %v3123_v31 = vsel %vm516_vm8, %v508_v0, %v531_v19  ;;  %v3199_v19 = vld [vmem:[%s3594_s4 + $0x1] ss:$0 sm:$0xff] }
  0xff   : > { %v544_v22 = vadd.f32 %v543_v18, %v3118_v21  ;;  %v558_v24 = vmul.f32 %v3118_v21, %v3118_v21  ;;  %v564_v25 = vadd.f32 %v563_v15, %v557_v14  ;;  %v3130_v37 = vsel %vm517_vm10, %v509_v11, %v532_v27  ;;  %v2079_v14 = vld [vmem:[%s3593_s3 + $0x1] ss:$0 sm:$0xff] }
 0x100   : > { %v3125_v33 = vsel %vm515_vm9, %v507_v12, %v530_v28  ;;  %v560_v41 = vmul.f32 %v3123_v31, %v3123_v31  ;;  %v561_v44 = vmul.f32 %v3130_v37, %v3130_v37  ;;  %v809_v0 = vsel %vm394_vm0, %v3088_v40, 0  ;;  %v3187_v40 = vld [vmem:[%s3592_s2 + $0x86] sm:$0x3] }
 0x101   : > { %v565_v30 = vadd.f32 %v564_v25, %v558_v24  ;;  %v545_v34 = vadd.f32 %v544_v22, %v3125_v33  ;;  %v559_v36 = vmul.f32 %v3125_v33, %v3125_v33  ;;  %v734_v1 = vlaneseq }
 0x103   : > { %v546_v42 = vadd.f32 %v545_v34, %v3123_v31  ;;  %v566_v43 = vadd.f32 %v565_v30, %v559_v36  ;;  %v735_v2 = vshrl.u32 %v734_v1, 7 }
 0x105   : > { %v567_v45 = vadd.f32 %v566_v43, %v560_v41  ;;  %v547_v46 = vadd.f32 %v546_v42, %v3130_v37  ;;  %v3191_v8 = vsub.s32 0, %v735_v2 }
 0x107   : > { %v568_v47 = vadd.f32 %v567_v45, %v561_v44  ;;  %v548_v48 = vrot.slane %v547_v46, 4 }
 0x109   : > { %v569_v49 = vrot.slane %v568_v47, 4  ;;  %v549_v50 = vadd.f32 %v548_v48, %v547_v46 }
 0x10b   : > { %v570_v51 = vadd.f32 %v569_v49, %v568_v47  ;;  %v550_v52 = vrot.slane %v549_v50, 2 }
 0x10d   : > { %v551_v54 = vadd.f32 %v550_v52, %v549_v50  ;;  %v571_v55 = vrot.slane %v570_v51, 2 }
 0x10f   : > { %v552_v58 = vrot.slane %v551_v54, 1  ;;  %v572_v59 = vadd.f32 %v571_v55, %v570_v51 }
 0x111   : > { %v553_v60 = vadd.f32 %v552_v58, %v551_v54  ;;  %v573_v61 = vrot.slane %v572_v59, 1 }
 0x113   : > { %2343 = vmatmul.mubr.f32.vlgmr.msra.gmra.mrb[0].mxu1 %v553_v60  ;;  %v574_v62 = vadd.f32 %v573_v61, %v572_v59 }
 0x114   : > { %2638 = vmatpush3.bf16.msra.mxu1 %v2990_v16  ;;  %2457 = vmatprep.mubr.msk.f32.mxu1 %vm2850_vm2, %v2851_v39 }
 0x115   : > { %2378 = vmatmul.mubr.f32.vlgmr.msra.gmra.mrb[8].mxu0 %v574_v62  ;;  %2639 = vmatprep.subr.bf16.mxu1 %v2849_v17 }
 0x116   : > { %2381 = vmatpush3.bf16.msra.mxu0 %v809_v0  ;;  %2382 = vmatprep.mubr.msk.bf16.mxu0 %vm381_vm1, %v2968_v5 }
 0x117   : > { %2612 = vmatprep.subr.bf16.mxu0 %v2849_v17 }
 0x118   : > { %2641 = vmatpush3.bf16.msra.mxu1 %v3004_v20 }
 0x119   : > { %2383 = vmatmul.mubr.msk.bf16.vlgmr.msra.gmra.mrb[12].mxu0 %vm381_vm1, %v2970_v9  ;;  %2642 = vmatprep.subr.bf16.mxu1 %v2849_v17 }
 0x11a   : > { %2386 = vmatprep.mubr.msk.bf16.mxu0 %vm381_vm1, %v2972_v10  ;;  %2614 = vmatpush3.bf16.msra.mxu0 %v2990_v16 }
 0x11b   : > { %2615 = vmatprep.subr.bf16.mxu0 %v2849_v17 }
 0x11c   : > { %2644 = vmatpush3.bf16.msra.mxu1 %v3016_v23 }
 0x11d   : > { %2645 = vmatprep.subr.bf16.mxu1 %v2849_v17 }
 0x11e   : > { %2617 = vmatpush3.bf16.msra.mxu0 %v3004_v20 }
 0x11f   : > { %2618 = vmatprep.subr.bf16.mxu0 %v2849_v17 }
 0x120   : > { %2647 = vmatpush3.bf16.msra.mxu1 %v3028_v26 }
 0x121   : > { %2387 = vmatmul.mubr.msk.bf16.gmra.mrb[16].mxu0 %vm381_vm1, %v2980_v13  ;;  %2648 = vmatprep.subr.bf16.mxu1 %v2849_v17 }
 0x122   : > { %2620 = vmatpush3.bf16.msra.mxu0 %v3016_v23  ;;  %2422 = vmatprep.mubr.msk.f32.mxu0 %vm2850_vm2, %v2851_v39 }
 0x123   : > { %2621 = vmatprep.subr.bf16.mxu0 %v2849_v17 }
 0x124   : > { %2650 = vmatpush3.bf16.msra.mxu1 %v3040_v29 }
 0x125   : > { %2651 = vmatprep.subr.bf16.mxu1 %v2849_v17 }
 0x126   : > { %2623 = vmatpush3.bf16.msra.mxu0 %v3028_v26 }
 0x127   : > { %2624 = vmatprep.subr.bf16.mxu0 %v2849_v17 }
 0x128   : > { %2653 = vmatpush3.bf16.msra.mxu1 %v3052_v32 }
 0x129   : > { %2654 = vmatprep.subr.bf16.mxu1 %v2849_v17 }
 0x12a   : > { %2626 = vmatpush3.bf16.msra.mxu0 %v3040_v29 }
 0x12b   : > { %2627 = vmatprep.subr.bf16.mxu0 %v2849_v17 }
 0x12c   : > { %2656 = vmatpush3.bf16.msra.mxu1 %v3064_v35 }
 0x12d   : > { %2657 = vmatprep.subr.bf16.mxu1 %v2849_v17 }
 0x12e   : > { %2629 = vmatpush3.bf16.msra.mxu0 %v3052_v32 }
 0x12f   : > { %2630 = vmatprep.subr.bf16.mxu0 %v2849_v17 }
 0x130   : > { %2659 = vmatpush3.bf16.msra.mxu1 %v3074_v38 }
 0x131   : > { %2660 = vmatprep.subr.bf16.mxu1 %v2849_v17 }
 0x132   : > { %2632 = vmatpush3.bf16.msra.mxu0 %v3064_v35 }
 0x133   : > { %2633 = vmatprep.subr.bf16.mxu0 %v2849_v17 }
 0x136   : > { %2635 = vmatpush3.bf16.msra.mxu0 %v3074_v38 }
 0x137   : > { %2710 = vmatprep.subr.msk.bf16.mxu0 %vm394_vm0, %v3187_v40 }
 0x1e6   : > { %v657_v3 = vpop.f32.mrb[0].mxu1 }
 0x1e7   : > { %v731_v4 = vmul.f32 %v657_v3, %v657_v3  ;;  %v2344_v6 = vpop.f32.mrb[1].mxu1  ;;  %v3202_v22 = vrot.slane %v657_v3, %v3191_v8 }
 0x1e8   : > { %v727_v7 = vpop.f32.mrb[8].mxu0 }
 0x1e9   : > { %v732_v11 = vsub.f32 %v727_v7, %v731_v4  ;;  %v2379_v12 = vpop.f32.mrb[9].mxu0  ;;  %v738_v44 = vsub.f32 %v3098_v53, %v3202_v22  ;;  %v739_v45 = vsub.f32 %v3102_v57, %v3202_v22  ;;  %v740_v50 = vsub.f32 %v3100_v56, %v3202_v22 }
 0x1ea   : > { %v741_v51 = vsub.f32 %v3110_v63, %v3202_v22  ;;  %v742_v57 = vsub.f32 %v3118_v21, %v3202_v22  ;;  %v743_v54 = vsub.f32 %v3125_v33, %v3202_v22  ;;  %v744_v55 = vsub.f32 %v3123_v31, %v3202_v22 }
 0x1eb   : > { %v733_v15 = vmax.f32 %v732_v11, 0.0  ;;  %v745_v31 = vsub.f32 %v3130_v37, %v3202_v22 }
 0x1ec   : > { %v2384_v18 = vpop.f32.mrb[12].mxu0 }
 0x1ed   : > { %v746_v24 = vadd.f32 1e-05, %v733_v15  ;;  %v918_v25 = vadd.f32 %v2384_v18, %v2079_v14  ;;  %v845_v27 = vpop.f32.mrb[13].mxu0 }
 0x1ee   : > { %v916_v28 = vadd.f32 %v2079_v14, %v845_v27  ;;  %v2385_v30 = vpop.f32.mrb[14].mxu0 }
 0x1ef   : > { %2779 = vrsqrt.f32 %v746_v24  ;;  %v942_v34 = vmul.f32 %v3199_v19, %v918_v25  ;;  %v919_v36 = vadd.f32 %v2385_v30, %v2079_v14  ;;  %v848_v41 = vpop.f32.mrb[15].mxu0  ;;  %vm926_vm11 = vcmp.ge.f32.partialorder %v918_v25, 0.0 }
 0x1f0   : > { %vm924_vm12 = vcmp.ge.f32.partialorder %v916_v28, 0.0  ;;  %v940_v42 = vmul.f32 %v3199_v19, %v916_v28  ;;  %v917_v43 = vadd.f32 %v2079_v14, %v848_v41 }
 0x1f1   : > { %v943_v47 = vmul.f32 %v3199_v19, %v919_v36  ;;  %v3214_v49 = vsel %vm926_vm11, %v918_v25, %v942_v34  ;;  %vm927_vm14 = vcmp.ge.f32.partialorder %v919_v36, 0.0  ;;  %v2071_v34 = vld [vmem:[%s3595_s5] ss:$0 sm:$0xff] }
 0x1f2   : > { %v3210_v46 = vsel %vm924_vm12, %v916_v28, %v940_v42  ;;  %vm925_vm13 = vcmp.ge.f32.partialorder %v917_v43, 0.0  ;;  %v941_v48 = vmul.f32 %v3199_v19, %v917_v43  ;;  %v971_v21 = vmul.f32 %v3214_v49, %v3214_v49 }
 0x1f3   : > { %v969_v58 = vmul.f32 %v3210_v46, %v3210_v46  ;;  %v3236_v61 = vsel %vm927_vm14, %v919_v36, %v943_v47 }
 0x1f4   : > { %v3220_v53 = vsel %vm925_vm13, %v917_v43, %v941_v48  ;;  %v2388_v52 = vpop.f32.mrb[16].mxu0  ;;  %v972_v12 = vmul.f32 %v3236_v61, %v3236_v61  ;;  %v2072_v48 = vld [vmem:[%s3596_s6] ss:$0 sm:$0xff] }
 0x1f5   : > { %v956_v56 = vadd.f32 %v3220_v53, %v3210_v46  ;;  %v970_v63 = vmul.f32 %v3220_v53, %v3220_v53  ;;  %v922_v59 = vadd.f32 %v2388_v52, %v2079_v14  ;;  %v861_v60 = vpop.f32.mrb[17].mxu0 }
 0x1f6   : > { %v920_v33 = vadd.f32 %v2079_v14, %v861_v60  ;;  %v2389_v62 = vpop.f32.mrb[18].mxu0 }
 0x1f7   : > { %v957_v0 = vadd.f32 %v956_v56, %v3214_v49  ;;  %v977_v1 = vadd.f32 %v970_v63, %v969_v58  ;;  %vm930_vm15 = vcmp.ge.f32.partialorder %v922_v59, 0.0  ;;  %v946_v2 = vmul.f32 %v3199_v19, %v922_v59  ;;  %v864_v3 = vpop.f32.mrb[19].mxu0 }
 0x1f8   : > { %vm928_vm3 = vcmp.ge.f32.partialorder %v920_v33, 0.0  ;;  %v944_v4 = vmul.f32 %v3199_v19, %v920_v33  ;;  %v923_v6 = vadd.f32 %v2389_v62, %v2079_v14  ;;  %v921_v7 = vadd.f32 %v2079_v14, %v864_v3 }
 0x1f9   : > { %v2780_v11 = vpop.eup %2779  ;;  %v978_v15 = vadd.f32 %v977_v1, %v971_v21  ;;  %v3245_v18 = vsel %vm930_vm15, %v922_v59, %v946_v2  ;;  %v958_v37 = vadd.f32 %v957_v0, %v3236_v61 }
 0x1fa   : > { %v751_v22 = vrot.slane %v2780_v11, %v3191_v8  ;;  %v975_v24 = vmul.f32 %v3245_v18, %v3245_v18  ;;  %v3251_v25 = vsel %vm928_vm3, %v920_v33, %v944_v4  ;;  %vm931_vm4 = vcmp.ge.f32.partialorder %v923_v6, 0.0 }
 0x1fb   : > { %v959_v27 = vadd.f32 %v958_v37, %v3251_v25  ;;  %v973_v14 = vmul.f32 %v3251_v25, %v3251_v25  ;;  %v979_v28 = vadd.f32 %v978_v15, %v972_v12  ;;  %v947_v30 = vmul.f32 %v3199_v19, %v923_v6 }
 0x1fc   : > { %vm929_vm5 = vcmp.ge.f32.partialorder %v921_v7, 0.0  ;;  %v945_v36 = vmul.f32 %v3199_v19, %v921_v7  ;;  %v752_v41 = vmul.f32 %v751_v22, %v738_v44  ;;  %v753_v42 = vmul.f32 %v751_v22, %v739_v45 }
 0x1fd   : > { %v980_v43 = vadd.f32 %v979_v28, %v973_v14  ;;  %v3261_v47 = vsel %vm931_vm4, %v923_v6, %v947_v30  ;;  %v754_v52 = vmul.f32 %v751_v22, %v740_v50  ;;  %v755_v58 = vmul.f32 %v751_v22, %v741_v51 }
 0x1fe   : > { %v976_v56 = vmul.f32 %v3261_v47, %v3261_v47  ;;  %v3268_v63 = vsel %vm929_vm5, %v921_v7, %v945_v36  ;;  %v767_v59 = vmul.f32 %v2071_v34, %v752_v41  ;;  %v768_v60 = vmul.f32 %v2071_v34, %v753_v42 }
 0x1ff   : > { %v960_v19 = vadd.f32 %v959_v27, %v3268_v63  ;;  %v974_v44 = vmul.f32 %v3268_v63, %v3268_v63  ;;  %v769_v45 = vmul.f32 %v2071_v34, %v754_v52  ;;  %v770_v21 = vmul.f32 %v2071_v34, %v755_v58 }
 0x200   : > { %v3273_v33 = vadd.f32 %v2072_v48, %v767_v59  ;;  %v3275_v62 = vadd.f32 %v2072_v48, %v768_v60  ;;  %v756_v50 = vmul.f32 %v751_v22, %v742_v57  ;;  %v757_v51 = vmul.f32 %v751_v22, %v743_v54 }
 0x201   : > { %v961_v0 = vadd.f32 %v960_v19, %v3245_v18  ;;  %v981_v1 = vadd.f32 %v980_v43, %v974_v44  ;;  %v3278_v2 = vadd.f32 %v2072_v48, %v769_v45  ;;  %v3280_v3 = vadd.f32 %v2072_v48, %v770_v21 }
 0x202   : > { %v790_v4 = vpack.c.bf16 %v3275_v62, %v3273_v33  ;;  %v771_v6 = vmul.f32 %v2071_v34, %v756_v50  ;;  %v772_v7 = vmul.f32 %v2071_v34, %v757_v51  ;;  %v758_v11 = vmul.f32 %v751_v22, %v744_v55  ;;  %v2772_v33 = vld [vmem:[%s3598_s8 + $0x88] sm:$0xff]   ;;  %v2773_v62 = vld [vmem:[%s3598_s8 + $0x90] sm:$0xff]  }
 0x203   : > { %v962_v12 = vadd.f32 %v961_v0, %v3261_v47  ;;  %v982_v15 = vadd.f32 %v981_v1, %v975_v24  ;;  %v791_v57 = vpack.c.bf16 %v3280_v3, %v3278_v2  ;;  %v759_v54 = vmul.f32 %v751_v22, %v745_v31  ;;  %v2774_v2 = vld [vmem:[%s3598_s8 + $0x98] sm:$0xff]   ;;  %v2775_v3 = vld [vmem:[%s3598_s8 + $0xa0] sm:$0xff]  }
 0x204   : > { %v3287_v37 = vadd.f32 %v2072_v48, %v771_v6  ;;  %v3289_v27 = vadd.f32 %v2072_v48, %v772_v7  ;;  %v773_v14 = vmul.f32 %v2071_v34, %v758_v11 }
 0x205   : > { %v963_v28 = vrot.slane %v962_v12, 4  ;;  %v983_v30 = vadd.f32 %v982_v15, %v976_v56  ;;  %v774_v36 = vmul.f32 %v2071_v34, %v759_v54  ;;  %v1226_v34 = vsel %vm394_vm0, %v3187_v40, 0 }
 0x206   : > { %v792_v41 = vpack.c.bf16 %v3289_v27, %v3287_v37  ;;  %v3293_v42 = vadd.f32 %v2072_v48, %v773_v14  ;;  %v2778_v37 = vld [vmem:[%s3598_s8 + $0xb8] sm:$0xff]  }
 0x207   : > { %v964_v55 = vadd.f32 %v963_v28, %v962_v12  ;;  %v984_v43 = vrot.slane %v983_v30, 4  ;;  %v3295_v24 = vadd.f32 %v2072_v48, %v774_v36 }
 0x209   : > { %v965_v52 = vrot.slane %v964_v55, 2  ;;  %v985_v58 = vadd.f32 %v984_v43, %v983_v30  ;;  %v793_v31 = vpack.c.bf16 %v3295_v24, %v3293_v42 }
 0x20b   : > { %v966_v22 = vadd.f32 %v965_v52, %v964_v55  ;;  %v986_v59 = vrot.slane %v985_v58, 2 }
 0x20d   : > { %v967_v60 = vrot.slane %v966_v22, 1  ;;  %v987_v19 = vadd.f32 %v986_v59, %v985_v58 }
 0x20f   : > { %v968_v56 = vadd.f32 %v967_v60, %v966_v22  ;;  %v988_v44 = vrot.slane %v987_v19, 1 }
 0x211   : > { %2423 = vmatmul.mubr.f32.vlgmr.msra.gmra.mrb[10].mxu0 %v968_v56  ;;  %v989_v45 = vadd.f32 %v988_v44, %v987_v19 }
 0x212   : > { %2461 = vmatpush3.bf16.msra.mxu0 %v1226_v34  ;;  %2462 = vmatprep.mubr.msk.bf16.mxu0 %vm381_vm1, %v2968_v5  ;;  %v2755_v5 = vld [vmem:[%s3598_s8 + $0x40] sm:$0xff]  }
 0x213   : > { %2458 = vmatmul.mubr.f32.vlgmr.msra.gmra.mrb[2].mxu1 %v989_v45  ;;  %2684 = vmatprep.subr.bf16.mxu0 %v2849_v17 }
 0x214   : > { %2662 = vmatpush3.bf16.msra.mxu1 %v2990_v16  ;;  %2502 = vmatprep.mubr.msk.f32.mxu1 %vm2850_vm2, %v2851_v39 }
 0x215   : > { %2463 = vmatmul.mubr.msk.bf16.vlgmr.msra.gmra.mrb[20].mxu0 %vm381_vm1, %v2970_v9  ;;  %2663 = vmatprep.subr.bf16.mxu1 %v2849_v17  ;;  %v3350_v9 = vld [vmem:[%s3598_s8 + $0x80] sm:$0xff]  }
 0x216   : > { %2466 = vmatprep.mubr.msk.bf16.mxu0 %vm381_vm1, %v2972_v10  ;;  %2686 = vmatpush3.bf16.msra.mxu0 %v2990_v16 }
 0x217   : > { %2687 = vmatprep.subr.bf16.mxu0 %v2849_v17 }
 0x218   : > { %2665 = vmatpush3.bf16.msra.mxu1 %v3004_v20 }
 0x219   : > { %2666 = vmatprep.subr.bf16.mxu1 %v2849_v17 }
 0x21a   : > { %2689 = vmatpush3.bf16.msra.mxu0 %v3004_v20  ;;  %v2092_v20 = vld [vmem:[%s3593_s3 + $0x2] ss:$0 sm:$0xff] }
 0x21b   : > { %2690 = vmatprep.subr.bf16.mxu0 %v2849_v17 }
 0x21c   : > { %2668 = vmatpush3.bf16.msra.mxu1 %v3016_v23 }
 0x21d   : > { %2467 = vmatmul.mubr.msk.bf16.gmra.mrb[24].mxu0 %vm381_vm1, %v2980_v13  ;;  %2669 = vmatprep.subr.bf16.mxu1 %v2849_v17 }
 0x21e   : > { %2692 = vmatpush3.bf16.msra.mxu0 %v3016_v23  ;;  %2537 = vmatprep.mubr.msk.f32.mxu0 %vm2850_vm2, %v2851_v39 }
 0x21f   : > { %2693 = vmatprep.subr.bf16.mxu0 %v2849_v17 }
 0x220   : > { %2671 = vmatpush3.bf16.msra.mxu1 %v3028_v26 }
 0x221   : > { %2672 = vmatprep.subr.bf16.mxu1 %v2849_v17 }
 0x222   : > { %2695 = vmatpush3.bf16.msra.mxu0 %v3028_v26 }
 0x223   : > { %2696 = vmatprep.subr.bf16.mxu0 %v2849_v17 }
 0x224   : > { %2674 = vmatpush3.bf16.msra.mxu1 %v3040_v29 }
 0x225   : > { %2675 = vmatprep.subr.bf16.mxu1 %v2849_v17 }
 0x226   : > { %2698 = vmatpush3.bf16.msra.mxu0 %v3040_v29 }
 0x227   : > { %2699 = vmatprep.subr.bf16.mxu0 %v2849_v17 }
 0x228   : > { %2677 = vmatpush3.bf16.msra.mxu1 %v3052_v32 }
 0x229   : > { %2678 = vmatprep.subr.bf16.mxu1 %v2849_v17 }
 0x22a   : > { %2701 = vmatpush3.bf16.msra.mxu0 %v3052_v32  ;;  %v3359_v32 = vld [vmem:[%s3594_s4 + $0x2] ss:$0 sm:$0xff] }
 0x22b   : > { %2702 = vmatprep.subr.bf16.mxu0 %v2849_v17 }
 0x22c   : > { %2680 = vmatpush3.bf16.msra.mxu1 %v3064_v35 }
 0x22d   : > { %2681 = vmatprep.subr.bf16.mxu1 %v2849_v17 }
 0x22e   : > { %2704 = vmatpush3.bf16.msra.mxu0 %v3064_v35 }
 0x22f   : > { %2705 = vmatprep.subr.bf16.mxu0 %v2849_v17 }
 0x230   : > { %2683 = vmatpush3.bf16.msra.mxu1 %v3074_v38 }
 0x231   : > { %2248 = vmatprep.subr.bf16.mxu1 %v2755_v5 }
 0x232   : > { %2707 = vmatpush3.bf16.msra.mxu0 %v3074_v38 }
 0x233   : > { %2540 = vmatprep.subr.bf16.mxu0 %v3350_v9 }
 0x2e4   : > { %v1072_v10 = vpop.f32.mrb[10].mxu0 }
 0x2e5   : > { %v1146_v13 = vmul.f32 %v1072_v10, %v1072_v10  ;;  %v2424_v16 = vpop.f32.mrb[11].mxu0  ;;  %v3362_v21 = vrot.slane %v1072_v10, %v3191_v8 }
 0x2e6   : > { %v1142_v17 = vpop.f32.mrb[2].mxu1 }
 0x2e7   : > { %v1147_v23 = vsub.f32 %v1142_v17, %v1146_v13  ;;  %v2459_v26 = vpop.f32.mrb[3].mxu1  ;;  %v1153_v14 = vsub.f32 %v3210_v46, %v3362_v21  ;;  %v1154_v36 = vsub.f32 %v3220_v53, %v3362_v21  ;;  %v1155_v55 = vsub.f32 %v3214_v49, %v3362_v21 }
 0x2e8   : > { %v2464_v29 = vpop.f32.mrb[20].mxu0  ;;  %v1156_v43 = vsub.f32 %v3236_v61, %v3362_v21  ;;  %v1157_v61 = vsub.f32 %v3251_v25, %v3362_v21  ;;  %v1158_v25 = vsub.f32 %v3268_v63, %v3362_v21 }
 0x2e9   : > { %v1148_v35 = vmax.f32 %v1147_v23, 0.0  ;;  %v1335_v38 = vadd.f32 %v2464_v29, %v2092_v20  ;;  %v1262_v39 = vpop.f32.mrb[21].mxu0 }
 0x2ea   : > { %v1333_v40 = vadd.f32 %v2092_v20, %v1262_v39  ;;  %v2465_v48 = vpop.f32.mrb[22].mxu0 }
 0x2eb   : > { %v1161_v50 = vadd.f32 1e-05, %v1148_v35  ;;  %v1359_v51 = vmul.f32 %v3359_v32, %v1335_v38  ;;  %v1336_v0 = vadd.f32 %v2465_v48, %v2092_v20  ;;  %v1265_v1 = vpop.f32.mrb[23].mxu0  ;;  %vm1343_vm0 = vcmp.ge.f32.partialorder %v1335_v38, 0.0 }
 0x2ec   : > { %vm1341_vm1 = vcmp.ge.f32.partialorder %v1333_v40, 0.0  ;;  %v1357_v6 = vmul.f32 %v3359_v32, %v1333_v40  ;;  %v1334_v7 = vadd.f32 %v2092_v20, %v1265_v1 }
 0x2ed   : > { %2781 = vrsqrt.f32 %v1161_v50  ;;  %v1360_v12 = vmul.f32 %v3359_v32, %v1336_v0  ;;  %v3370_v54 = vsel %vm1343_vm0, %v1335_v38, %v1359_v51  ;;  %vm1344_vm6 = vcmp.ge.f32.partialorder %v1336_v0, 0.0 }
 0x2ee   : > { %v3366_v11 = vsel %vm1341_vm1, %v1333_v40, %v1357_v6  ;;  %vm1342_vm2 = vcmp.ge.f32.partialorder %v1334_v7, 0.0  ;;  %v1358_v15 = vmul.f32 %v3359_v32, %v1334_v7  ;;  %v1388_v53 = vmul.f32 %v3370_v54, %v3370_v54 }
 0x2ef   : > { %v1386_v52 = vmul.f32 %v3366_v11, %v3366_v11  ;;  %v3390_v60 = vsel %vm1344_vm6, %v1336_v0, %v1360_v12  ;;  %v1159_v51 = vsub.f32 %v3245_v18, %v3362_v21  ;;  %v1160_v12 = vsub.f32 %v3261_v47, %v3362_v21 }
 0x2f0   : > { %v3374_v28 = vsel %vm1342_vm2, %v1334_v7, %v1358_v15  ;;  %v2468_v30 = vpop.f32.mrb[24].mxu0  ;;  %v1389_v16 = vmul.f32 %v3390_v60, %v3390_v60  ;;  %v2083_v7 = vld [vmem:[%s3595_s5 + $0x1] ss:$0 sm:$0xff] }
 0x2f1   : > { %v1373_v58 = vadd.f32 %v3374_v28, %v3366_v11  ;;  %v1387_v46 = vmul.f32 %v3374_v28, %v3374_v28  ;;  %v1339_v22 = vadd.f32 %v2468_v30, %v2092_v20  ;;  %v1278_v59 = vpop.f32.mrb[25].mxu0 }
 0x2f2   : > { %v1337_v49 = vadd.f32 %v2092_v20, %v1278_v59  ;;  %v2469_v19 = vpop.f32.mrb[26].mxu0 }
 0x2f3   : > { %v1374_v56 = vadd.f32 %v1373_v58, %v3370_v54  ;;  %v1394_v34 = vadd.f32 %v1387_v46, %v1386_v52  ;;  %vm1347_vm7 = vcmp.ge.f32.partialorder %v1339_v22, 0.0  ;;  %v1363_v44 = vmul.f32 %v3359_v32, %v1339_v22  ;;  %v1281_v45 = vpop.f32.mrb[27].mxu0  ;;  %v2085_v46 = vld [vmem:[%s3596_s6 + $0x1] ss:$0 sm:$0xff] }
 0x2f4   : > { %vm1345_vm8 = vcmp.ge.f32.partialorder %v1337_v49, 0.0  ;;  %v1361_v5 = vmul.f32 %v3359_v32, %v1337_v49  ;;  %v1340_v10 = vadd.f32 %v2469_v19, %v2092_v20  ;;  %v1338_v13 = vadd.f32 %v2092_v20, %v1281_v45 }
 0x2f5   : > { %v1395_v17 = vadd.f32 %v1394_v34, %v1388_v53  ;;  %v1375_v23 = vadd.f32 %v1374_v56, %v3390_v60  ;;  %v3402_v26 = vsel %vm1347_vm7, %v1339_v22, %v1363_v44 }
 0x2f6   : > { %v3404_v29 = vsel %vm1345_vm8, %v1337_v49, %v1361_v5  ;;  %vm1348_vm9 = vcmp.ge.f32.partialorder %v1340_v10, 0.0  ;;  %v1364_v35 = vmul.f32 %v3359_v32, %v1340_v10  ;;  %vm1346_vm10 = vcmp.ge.f32.partialorder %v1338_v13, 0.0 }
 0x2f7   : > { %v2782_v38 = vpop.eup %2781  ;;  %v1376_v39 = vadd.f32 %v1375_v23, %v3404_v29  ;;  %v1390_v20 = vmul.f32 %v3404_v29, %v3404_v29  ;;  %v1396_v40 = vadd.f32 %v1395_v17, %v1389_v16  ;;  %v1362_v63 = vmul.f32 %v3359_v32, %v1338_v13 }
 0x2f8   : > { %v1166_v48 = vrot.slane %v2782_v38, %v3191_v8  ;;  %v3411_v50 = vsel %vm1348_vm9, %v1340_v10, %v1364_v35  ;;  %v1392_v0 = vmul.f32 %v3402_v26, %v3402_v26 }
 0x2f9   : > { %v1397_v1 = vadd.f32 %v1396_v40, %v1390_v20  ;;  %v1393_v6 = vmul.f32 %v3411_v50, %v3411_v50  ;;  %v3425_v15 = vsel %vm1346_vm10, %v1338_v13, %v1362_v63 }
 0x2fa   : > { %v1167_v32 = vmul.f32 %v1166_v48, %v1153_v14  ;;  %v1168_v30 = vmul.f32 %v1166_v48, %v1154_v36  ;;  %v1169_v52 = vmul.f32 %v1166_v48, %v1155_v55  ;;  %v1377_v18 = vadd.f32 %v1376_v39, %v3425_v15 }
 0x2fb   : > { %v1391_v58 = vmul.f32 %v3425_v15, %v3425_v15  ;;  %v1170_v22 = vmul.f32 %v1166_v48, %v1156_v43  ;;  %v1171_v59 = vmul.f32 %v1166_v48, %v1157_v61  ;;  %v1172_v47 = vmul.f32 %v1166_v48, %v1158_v25 }
 0x2fc   : > { %v1183_v53 = vmul.f32 %v2083_v7, %v1167_v32  ;;  %v1184_v49 = vmul.f32 %v2083_v7, %v1168_v30  ;;  %v1185_v19 = vmul.f32 %v2083_v7, %v1169_v52  ;;  %v1378_v21 = vadd.f32 %v1377_v18, %v3402_v26 }
 0x2fd   : > { %v1398_v14 = vadd.f32 %v1397_v1, %v1391_v58  ;;  %v1186_v36 = vmul.f32 %v2083_v7, %v1170_v22  ;;  %v1187_v55 = vmul.f32 %v2083_v7, %v1171_v59  ;;  %v1188_v45 = vmul.f32 %v2083_v7, %v1172_v47  ;;  %v2761_v47 = vld [vmem:[%s3598_s8 + $0x58] sm:$0xff]  }
 0x2fe   : > { %v1199_v56 = vadd.f32 %v2085_v46, %v1183_v53  ;;  %v1200_v34 = vadd.f32 %v2085_v46, %v1184_v49  ;;  %v3434_v44 = vadd.f32 %v2085_v46, %v1185_v19  ;;  %v1379_v5 = vadd.f32 %v1378_v21, %v3411_v50  ;;  %v2759_v49 = vld [vmem:[%s3598_s8 + $0x50] sm:$0xff]   ;;  %v2762_v21 = vld [vmem:[%s3598_s8 + $0x18] sm:$0xff]  }
 0x2ff   : > { %v1399_v10 = vadd.f32 %v1398_v14, %v1392_v0  ;;  %v1202_v13 = vadd.f32 %v2085_v46, %v1186_v36  ;;  %v1203_v43 = vadd.f32 %v2085_v46, %v1187_v55  ;;  %v1204_v16 = vadd.f32 %v2085_v46, %v1188_v45  ;;  %v2760_v19 = vld [vmem:[%s3598_s8 + $0x10] sm:$0xff]   ;;  %v2764_v14 = vld [vmem:[%s3598_s8 + $0x20] sm:$0xff]   ;;  %v2765_v36 = vld [vmem:[%s3598_s8 + $0x68] sm:$0xff]  }
 0x300   : > { %v1207_v61 = vpack.c.bf16 %v1200_v34, %v1199_v56  ;;  %v1173_v17 = vmul.f32 %v1166_v48, %v1159_v51  ;;  %v1174_v23 = vmul.f32 %v1166_v48, %v1160_v12  ;;  %v1380_v25 = vrot.slane %v1379_v5, 4  ;;  %v2756_v48 = vld [vmem:[%s3598_s8] sm:$0xff]   ;;  %v2766_v55 = vld [vmem:[%s3598_s8 + $0x28] sm:$0xff]   ;;  %v2767_v56 = vld [vmem:[%s3598_s8 + $0x70] sm:$0xff]  }
 0x301   : > { %v1400_v35 = vadd.f32 %v1399_v10, %v1393_v6  ;;  %v1208_v38 = vpack.c.bf16 %v1202_v13, %v3434_v44  ;;  %v1209_v39 = vpack.c.bf16 %v1204_v16, %v1203_v43  ;;  %v2768_v34 = vld [vmem:[%s3598_s8 + $0x30] sm:$0xff]   ;;  %v2769_v44 = vld [vmem:[%s3598_s8 + $0x78] sm:$0xff]  }
 0x302   : > { %v1189_v20 = vmul.f32 %v2083_v7, %v1173_v17  ;;  %v1190_v40 = vmul.f32 %v2083_v7, %v1174_v23  ;;  %v1381_v1 = vadd.f32 %v1380_v25, %v1379_v5  ;;  %v2757_v7 = vld [vmem:[%s3598_s8 + $0x48] sm:$0xff]   ;;  %v2770_v45 = vld [vmem:[%s3598_s8 + $0x38] sm:$0xff]  }
 0x303   : > { %v1401_v63 = vrot.slane %v1400_v35, 4 }
 0x304   : > { %v1205_v32 = vadd.f32 %v2085_v46, %v1189_v20  ;;  %v1206_v30 = vadd.f32 %v2085_v46, %v1190_v40  ;;  %v1382_v18 = vrot.slane %v1381_v1, 2  ;;  %v2758_v46 = vld [vmem:[%s3598_s8 + $0x8] sm:$0xff]  }
 0x305   : > { %v1402_v52 = vadd.f32 %v1401_v63, %v1400_v35 }
 0x306   : > { %v1210_v0 = vpack.c.bf16 %v1206_v30, %v1205_v32  ;;  %v1383_v58 = vadd.f32 %v1382_v18, %v1381_v1 }
 0x307   : > { %v1403_v22 = vrot.slane %v1402_v52, 2 }
 0x308   : > { %v1384_v59 = vrot.slane %v1383_v58, 1 }
 0x309   : > { %v1404_v53 = vadd.f32 %v1403_v22, %v1402_v52 }
 0x30a   : > { %v1385_v51 = vadd.f32 %v1384_v59, %v1383_v58 }
 0x30b   : > { %v1405_v6 = vrot.slane %v1404_v53, 1 }
 0x30c   : > { %2503 = vmatmul.mubr.f32.vlgmr.msra.gmra.mrb[4].mxu1 %v1385_v51 }
 0x30d   : > { %v1406_v12 = vadd.f32 %v1405_v6, %v1404_v53  ;;  %2249 = vmatpush3.bf16.msra.mxu1 %v2756_v48  ;;  %1875 = vmatprep.mubr.bf16.mxu1 %v1207_v61 }
 0x30e   : > { %2250 = vmatprep.subr.bf16.mxu1 %v2757_v7 }
 0x30f   : > { %2538 = vmatmul.mubr.f32.vlgmr.msra.gmra.mrb[28].mxu0 %v1406_v12 }
 0x310   : > { %2541 = vmatpush3.bf16.msra.mxu0 %v3350_v9  ;;  %v2763_v9 = vld [vmem:[%s3598_s8 + $0x60] sm:$0xff]  }
 0x311   : > { %2251 = vmatpush3.bf16.msra.mxu1 %v2758_v46  ;;  %2542 = vmatprep.subr.bf16.mxu0 %v2772_v33 }
 0x312   : > { %2252 = vmatprep.subr.bf16.mxu1 %v2759_v49 }
 0x314   : > { %2543 = vmatpush3.bf16.msra.mxu0 %v2772_v33 }
 0x315   : > { %2253 = vmatpush3.bf16.msra.mxu1 %v2760_v19  ;;  %2544 = vmatprep.subr.bf16.mxu0 %v2773_v62 }
 0x316   : > { %2254 = vmatprep.subr.bf16.mxu1 %v2761_v47 }
 0x318   : > { %2545 = vmatpush3.bf16.msra.mxu0 %v2773_v62 }
 0x319   : > { %2255 = vmatpush3.bf16.msra.mxu1 %v2762_v21  ;;  %2546 = vmatprep.subr.bf16.mxu0 %v2774_v2 }
 0x31a   : > { %2256 = vmatprep.subr.bf16.mxu1 %v2763_v9 }
 0x31c   : > { %2547 = vmatpush3.bf16.msra.mxu0 %v2774_v2 }
 0x31d   : > { %2257 = vmatpush3.bf16.msra.mxu1 %v2764_v14  ;;  %2548 = vmatprep.subr.bf16.mxu0 %v2775_v3 }
 0x31e   : > { %2258 = vmatprep.subr.bf16.mxu1 %v2765_v36 }
 0x320   : > { %2549 = vmatpush3.bf16.msra.mxu0 %v2775_v3 }
 0x321   : > { %2259 = vmatpush3.bf16.msra.mxu1 %v2766_v55 }
 0x322   : > { %2260 = vmatprep.subr.bf16.mxu1 %v2767_v56 }
 0x325   : > { %2261 = vmatpush3.bf16.msra.mxu1 %v2768_v34 }
 0x326   : > { %2262 = vmatprep.subr.bf16.mxu1 %v2769_v44 }
 0x329   : > { %2263 = vmatpush3.bf16.msra.mxu1 %v2770_v45 }
 0x32c   : > { %1876 = vmatmul.mubr.bf16.vlgmr.msra.gmra.mrb[8].mxu1 %v790_v4  ;;  %v2776_v4 = vld [vmem:[%s3598_s8 + $0xa8] sm:$0xff]  }
 0x32d   : > { %1883 = vmatprep.mubr.bf16.mxu1 %v1208_v38  ;;  %2550 = vmatprep.subr.bf16.mxu0 %v2776_v4  ;;  %v2096_v38 = vld [vmem:[%s3595_s5 + $0x2] ss:$0 sm:$0xff] }
 0x32e   : > { %2551 = vmatpush3.bf16.msra.mxu0 %v2776_v4 }
 0x334   : > { %1884 = vmatmul.mubr.bf16.gmra.mrb[12].mxu1 %v791_v57  ;;  %v2777_v57 = vld [vmem:[%s3598_s8 + $0xb0] sm:$0xff]  }
 0x335   : > { %1891 = vmatprep.mubr.bf16.mxu1 %v1209_v39  ;;  %2552 = vmatprep.subr.bf16.mxu0 %v2777_v57 }
 0x336   : > { %2553 = vmatpush3.bf16.msra.mxu0 %v2777_v57 }
 0x337   : > { %2554 = vmatprep.subr.bf16.mxu0 %v2778_v37 }
 0x33a   : > { %2555 = vmatpush3.bf16.msra.mxu0 %v2778_v37 }
 0x33c   : > { %1892 = vmatmul.mubr.bf16.gmra.mrb[16].mxu1 %v792_v41 }
 0x33d   : > { %1899 = vmatprep.mubr.bf16.mxu1 %v1210_v0 }
 0x344   : > { %1900 = vmatmul.mubr.bf16.gmra.mrb[20].mxu1 %v793_v31 }
 0x3df   : > { %v1489_v27 = vpop.f32.mrb[4].mxu1 }
 0x3e0   : > { %v1563_v41 = vmul.f32 %v1489_v27, %v1489_v27  ;;  %v2504_v42 = vpop.f32.mrb[5].mxu1  ;;  %v1569_v43 = vrot.slane %v1489_v27, %v3191_v8 }
 0x3e2   : > { %v1559_v24 = vpop.f32.mrb[28].mxu0  ;;  %v1570_v16 = vsub.f32 %v3366_v11, %v1569_v43  ;;  %v1571_v23 = vsub.f32 %v3374_v28, %v1569_v43  ;;  %v1572_v25 = vsub.f32 %v3370_v54, %v1569_v43  ;;  %v1573_v35 = vsub.f32 %v3390_v60, %v1569_v43  ;;  %v2098_v54 = vld [vmem:[%s3596_s6 + $0x2] ss:$0 sm:$0xff] }
 0x3e3   : > { %v1564_v31 = vsub.f32 %v1559_v24, %v1563_v41  ;;  %v2539_v5 = vpop.f32.mrb[29].mxu0  ;;  %v1574_v39 = vsub.f32 %v3404_v29, %v1569_v43  ;;  %v1575_v20 = vsub.f32 %v3425_v15, %v1569_v43  ;;  %v1576_v40 = vsub.f32 %v3402_v26, %v1569_v43 }
 0x3e4   : > { %v1577_v11 = vsub.f32 %v3411_v50, %v1569_v43 }
 0x3e5   : > { %v1565_v10 = vmax.f32 %v1564_v31, 0.0 }
 0x3e7   : > { %v1578_v13 = vadd.f32 1e-05, %v1565_v10 }
 0x3e9   : > { %2783 = vrsqrt.f32 %v1578_v13 }
 0x3f3   : > { %v2784_v61 = vpop.eup %2783 }
 0x3f4   : > { %v1583_v17 = vrot.slane %v2784_v61, %v3191_v8  ;;  %v2099_v61 = vld [vmem:[%s3599_s9] ss:$0 sm:$0xff] }
 0x3f6   : > { %v1584_v63 = vmul.f32 %v1583_v17, %v1570_v16  ;;  %v1585_v8 = vmul.f32 %v1583_v17, %v1571_v23  ;;  %v1586_v1 = vmul.f32 %v1583_v17, %v1572_v25  ;;  %v1587_v28 = vmul.f32 %v1583_v17, %v1573_v35 }
 0x3f7   : > { %v1588_v60 = vmul.f32 %v1583_v17, %v1574_v39  ;;  %v1589_v32 = vmul.f32 %v1583_v17, %v1575_v20  ;;  %v1590_v30 = vmul.f32 %v1583_v17, %v1576_v40  ;;  %v1591_v52 = vmul.f32 %v1583_v17, %v1577_v11 }
 0x3f8   : > { %v1600_v18 = vmul.f32 %v2096_v38, %v1584_v63  ;;  %v1601_v29 = vmul.f32 %v2096_v38, %v1585_v8  ;;  %v1602_v0 = vmul.f32 %v2096_v38, %v1586_v1  ;;  %v1603_v15 = vmul.f32 %v2096_v38, %v1587_v28 }
 0x3f9   : > { %v1604_v58 = vmul.f32 %v2096_v38, %v1588_v60  ;;  %v1605_v26 = vmul.f32 %v2096_v38, %v1589_v32  ;;  %v1606_v22 = vmul.f32 %v2096_v38, %v1590_v30  ;;  %v1607_v50 = vmul.f32 %v2096_v38, %v1591_v52 }
 0x3fa   : > { %v1616_v59 = vadd.f32 %v2098_v54, %v1600_v18  ;;  %v1617_v53 = vadd.f32 %v2098_v54, %v1601_v29  ;;  %v1618_v48 = vadd.f32 %v2098_v54, %v1602_v0  ;;  %v1619_v51 = vadd.f32 %v2098_v54, %v1603_v15 }
 0x3fb   : > { %v1620_v6 = vadd.f32 %v2098_v54, %v1604_v58  ;;  %v1621_v7 = vadd.f32 %v2098_v54, %v1605_v26  ;;  %v1622_v12 = vadd.f32 %v2098_v54, %v1606_v22  ;;  %v1623_v46 = vadd.f32 %v2098_v54, %v1607_v50 }
 0x3fc   : > { %v1624_v49 = vpack.c.bf16 %v1617_v53, %v1616_v59  ;;  %v1625_v19 = vpack.c.bf16 %v1619_v51, %v1618_v48 }
 0x3fd   : > { %v1626_v47 = vpack.c.bf16 %v1621_v7, %v1620_v6  ;;  %v1627_v21 = vpack.c.bf16 %v1623_v46, %v1622_v12 }
 0x3fe   : > { %2556 = vmatprep.mubr.bf16.mxu0 %v1624_v49 }
 0x3ff   : > { %2557 = vmatmul.mubr.bf16.vlgmr.msra.gmra.mrb[32].mxu0 %v1625_v19  ;;  %v2264_v9 = vpop.f32.mrb[8].mxu1 }
 0x400   : > { %2560 = vmatprep.mubr.bf16.mxu0 %v1626_v47  ;;  %v2265_v14 = vpop.f32.mrb[9].mxu1 }
 0x401   : > { %v2266_v36 = vadd.f32 %v2265_v14, %v2264_v9  ;;  %v2267_v55 = vpop.f32.mrb[10].mxu1 }
 0x402   : > { %v2268_v56 = vpop.f32.mrb[11].mxu1 }
 0x403   : > { %v2269_v34 = vadd.f32 %v2268_v56, %v2267_v55  ;;  %v1878_v23 = vadd.f32 %v2266_v36, %v2099_v61 }
 0x405   : > { %v1881_v40 = vadd.f32 %v2269_v34, %v2099_v61 }
 0x407   : > { %2561 = vmatmul.mubr.bf16.gmra.mrb[36].mxu0 %v1627_v21  ;;  %v2270_v44 = vpop.f32.mrb[12].mxu1 }
 0x408   : > { %v2271_v45 = vpop.f32.mrb[13].mxu1 }
 0x409   : > { %v2272_v33 = vadd.f32 %v2271_v45, %v2270_v44  ;;  %v2273_v62 = vpop.f32.mrb[14].mxu1 }
 0x40a   : > { %v2274_v2 = vpop.f32.mrb[15].mxu1 }
 0x40b   : > { %v2275_v3 = vadd.f32 %v2274_v2, %v2273_v62  ;;  %v1886_v16 = vadd.f32 %v2272_v33, %v2099_v61 }
 0x40d   : > { %v1889_v38 = vadd.f32 %v2275_v3, %v2099_v61 }
 0x40f   : > { %v2276_v4 = vpop.f32.mrb[16].mxu1 }
 0x410   : > { %v2277_v57 = vpop.f32.mrb[17].mxu1 }
 0x411   : > { %v2278_v37 = vadd.f32 %v2277_v57, %v2276_v4  ;;  %v2279_v27 = vpop.f32.mrb[18].mxu1 }
 0x412   : > { %v2280_v41 = vpop.f32.mrb[19].mxu1 }
 0x413   : > { %v2281_v42 = vadd.f32 %v2280_v41, %v2279_v27  ;;  %v1894_v54 = vadd.f32 %v2278_v37, %v2099_v61 }
 0x415   : > { %v1897_v29 = vadd.f32 %v2281_v42, %v2099_v61 }
 0x417   : > { %v2282_v24 = vpop.f32.mrb[20].mxu1 }
 0x418   : > { %v2283_v31 = vpop.f32.mrb[21].mxu1 }
 0x419   : > { %v2284_v5 = vadd.f32 %v2283_v31, %v2282_v24  ;;  %v2285_v10 = vpop.f32.mrb[22].mxu1 }
 0x41a   : > { %v2286_v13 = vpop.f32.mrb[23].mxu1 }
 0x41b   : > { %v2287_v43 = vadd.f32 %v2286_v13, %v2285_v10  ;;  %v1902_v1 = vadd.f32 %v2284_v5, %v2099_v61 }
 0x41d   : > { %v1905_v30 = vadd.f32 %v2287_v43, %v2099_v61 }
 0x4d2   : > { %v2558_v17 = vpop.f32.mrb[32].mxu0 }
 0x4d3   : > { %v1951_v25 = vadd.f32 %v2558_v17, %v1886_v16  ;;  %v1942_v35 = vpop.f32.mrb[33].mxu0 }
 0x4d4   : > { %v1943_v39 = vadd.f32 %v1942_v35, %v1878_v23  ;;  %v2559_v20 = vpop.f32.mrb[34].mxu0 }
 0x4d5   : > { %1975 = vst [vmem:[%s352_s20 + $0x10] sm:$0xff] %v1951_v25  ;;  %v1954_v11 = vadd.f32 %v2559_v20, %v1889_v38  ;;  %v1945_v63 = vpop.f32.mrb[35].mxu0 }
 0x4d6   : > { %1973 = vst [vmem:[%s352_s20] sm:$0xff] %v1943_v39  ;;  %v1946_v8 = vadd.f32 %v1945_v63, %v1881_v40 }
 0x4d7   : > { %1976 = vst [vmem:[%s352_s20 + $0x18] sm:$0xff] %v1954_v11 }
 0x4d8   : > { %1974 = vst [vmem:[%s352_s20 + $0x8] sm:$0xff] %v1946_v8 }
 0x4da   : > { %v2562_v28 = vpop.f32.mrb[36].mxu0 }
 0x4db   : > { %v1967_v60 = vadd.f32 %v2562_v28, %v1902_v1  ;;  %v1958_v32 = vpop.f32.mrb[37].mxu0 }
 0x4dc   : > { %v1959_v52 = vadd.f32 %v1958_v32, %v1894_v54  ;;  %v2563_v18 = vpop.f32.mrb[38].mxu0 }
 0x4dd   : > { %1979 = vst [vmem:[%s352_s20 + $0x30] sm:$0xff] %v1967_v60  ;;  %v1970_v0 = vadd.f32 %v2563_v18, %v1905_v30  ;;  %v1961_v15 = vpop.f32.mrb[39].mxu0 }
 0x4de   : > { %1977 = vst [vmem:[%s352_s20 + $0x20] sm:$0xff] %v1959_v52  ;;  %v1962_v58 = vadd.f32 %v1961_v15, %v1897_v29 }
 0x4df   : > { %1980 = vst [vmem:[%s352_s20 + $0x38] sm:$0xff] %v1970_v0 }
 0x4e0   : > { %1978 = vst [vmem:[%s352_s20 + $0x28] sm:$0xff] %v1962_v58 }
 0x4e1   : > { %2798 = shalt.err (!%p2795_p3)
}
 0x4e2   : > { %s2799_s30 = scalar_lea.hbm %s3543_s1, 1024  ;;  %s2803_s24 = scalar_lea.hbm %s3600_s10, 2048 }
 0x4e3   : > { %p2800_p4 = scmp.ne.s32.totalorder %s3543_s1, %s2799_s30  ;;  %p2804_p9 = scmp.lt.u32.totalorder %s3543_s1, %s3600_s10 }
 0x4e4   : > { %p2805_p10 = scmp.lt.u32.totalorder %s2803_s24, %s2799_s30  ;;  %p2807_p12 = scmp.lt.u32.totalorder %s2799_s30, %s3543_s1 }
 0x4e5   : > { %p2801_p7 = pnand %p2800_p4, %p2948_p5 }
 0x4e6   : > { %p2806_p11 = por %p2805_p10, %p2804_p9 }
 0x4e7   : > { %p2802_p8 = pneg %p2801_p7 }
 0x4e8   : > { %p2808_p13 = por %p2807_p12, %p2806_p11 }
 0x4ea   : > { %p2809_p0 = pnand %p2808_p13, %p2802_p8 }
 0x4ec   : > { %2812 = shalt.err (!%p2809_p0)
}
 0x4ed   : > { %s2853_s28 = smov 128   ;;  %s2854_s29 = smov 8  }
 0x4ee   : > { %2711 = dma.vmem_to_hbm [thread:$0]  (%p2948_p5), %s3545_s25, 1024, %s3543_s1, %s3549_s16, %s2853_s28, %s2853_s28, %s2854_s29  }
 0x4ef PF: > { %p2717_p1 = scmp.ge.s32.totalorder %s2847_s15, 2  ;;  %s2010_s11 = sand.u32 1, %s2835_s12  }
 0x4f0   : > { %s2011_s17 = scalar_lea.sflag [#allocation5], %s2010_s11 }
 0x4f1   : > { %p2714_p2 = pnand %p2717_p1, %p2952_p6 }
 0x4f3   : > { %2830 = dma.done.wait (!%p2714_p2), %s2011_s17, 1024  }
 0x4f4   : > { %2832 = vsyncadd (!%p2714_p2), %s2011_s17, 4294966272  ;;  %p20_p3 = scmp.ge.s32.totalorder %s2935_s18, 4   ;;  %s3603_s12 = smov %s2839_s13 }
 0x4f5   : > { %s3604_s13 = smov %s2843_s14  ;;  %s3605_s14 = smov %s2946_s21 }
 0x4f6   : > { %s3606_s15 = smov %s2935_s18  ;;  %22 = sbr.rel (!%p20_p3) target bundleno = 3 (0x3), region = 106 }
 0x4fd   :  { %2016 = vsyncpa [#allocation5], 1 }
 0x4fe   :  { %2018 = vsyncpa [#allocation5 + $0x1], 1 }

</bundles_post_ra>
